<compile_context>
chip_gen: v6e
topology: v6e:2x2x1
jax: 0.10.0
libtpu: 0.0.40
codegen_flags: <defaults>
</compile_context>

<pallas_src>
import functools

import jax
import jax.numpy as jnp
from jax.experimental import pallas as pl
from jax.experimental.pallas import tpu as pltpu


def _spatial_attention_kernel(w_ref, colmask_ref, x_ref, o_ref, fscr_ref, *,
                              NB, C, HW, K, W, OFF):
    """One block of NB images per grid step.

    w_ref      : SMEM f32[2*K*K]   conv weights, (cin, kh, kw) order; the 1/C
                                   of the channel mean is pre-folded into cin=0
    colmask_ref: VMEM f32[K, HW]   per-kernel-column horizontal halo masks
    x_ref      : VMEM f32[NB, C, HW]   flat (lane-dense) input block
    o_ref      : VMEM f32[NB, C, HW]   attn * x
    fscr_ref   : VMEM f32[2, SW]   zero-padded flat scratch for the two maps
    """
    P = K // 2
    CH = 8 if C % 8 == 0 else C          # channel chunk (sublane multiple)

    # The halo region of the flat scratch must read as zero; only the interior
    # [OFF, OFF+HW) is overwritten per image, so zero the whole (few-KB)
    # scratch once per grid step.  (Unconditional, not program_id==0-gated:
    # under megacore each core owns its own scratch instance.)
    fscr_ref[...] = jnp.zeros_like(fscr_ref)

    for b in range(NB):                   # NB is small & static -> unrolled
        # ---- channel sum & max, chunked so large C never pins vregs --------
        s = None
        m = None
        for c0 in range(0, C, CH):
            blk = x_ref[b, c0:c0 + CH]                       # (CH, HW)
            bs = jnp.sum(blk, axis=0, keepdims=True)         # (1, HW)
            bm = jnp.max(blk, axis=0, keepdims=True)         # (1, HW)
            s = bs if s is None else s + bs
            m = bm if m is None else jnp.maximum(m, bm)

        # ---- place the two maps into the zero-padded flat scratch ----------
        # OFF is a multiple of 128, so these stores are lane-aligned.
        # (Raw channel sum is stored; 1/C lives in the cin=0 weights.)
        fscr_ref[0:1, OFF:OFF + HW] = s
        fscr_ref[1:2, OFF:OFF + HW] = m

        # ---- 7x7, 2-in / 1-out channel conv as 2*K*K shifted flat reads ----
        # Flat index identity: padded2d[y+i, x+j] == flat[q + (i-P)*W + (j-P)]
        # whenever 0 <= x+j-P < W; vertically out-of-range taps land in the
        # zeroed halo of the scratch, horizontally out-of-range taps are
        # zeroed by colmask[j].  K independent accumulators (one per kernel
        # column) break the serial dependence chain and the column mask is
        # applied once per column.
        acc = None
        for j in range(K):
            acc_j = None
            for cin in range(2):
                for i in range(K):
                    wv = w_ref[cin * K * K + i * K + j]       # SMEM scalar
                    off = OFF + (i - P) * W + (j - P)
                    term = wv * fscr_ref[cin:cin + 1, off:off + HW]
                    acc_j = term if acc_j is None else acc_j + term
            acc_j = acc_j * colmask_ref[j:j + 1, :]
            acc = acc_j if acc is None else acc + acc_j

        # ---- sigmoid on the EUP (no f32 divide on the VALU) -----------------
        attn = 0.5 * jnp.tanh(0.5 * acc) + 0.5               # (1, HW)

        # ---- out = attn * x : lane-dense (HW-wide) unmasked stores ----------
        for c0 in range(0, C, CH):
            o_ref[b, c0:c0 + CH] = x_ref[b, c0:c0 + CH] * attn


def _pick_batch_block(N, C, HW):
    """Images per grid step.

    Amortizes the ~0.35us/step grid overhead and fattens the per-step DMA,
    while (a) keeping double-buffered in+out blocks a few MiB so they fit the
    smallest default scoped-VMEM budget (v5e 16 MiB; v7x has only 64 MiB
    physical), and (b) keeping the grid length >= 2 so "parallel" semantics
    can shard steps across v7x's two TensorCores.
    """
    per_image = C * HW * 4                                  # f32 bytes
    cap = max(1, (2 * 1024 * 1024) // max(per_image, 1))    # <= 2 MiB x-block
    cap = min(cap, 8)                                       # bounded unroll
    if N >= 2:
        cap = min(cap, N // 2)                              # grid length >= 2
    nb = 1
    for d in range(1, cap + 1):                             # largest divisor
        if N % d == 0:
            nb = d
    return nb


def spatial_attention(x, w):
    """SpatialAttention.forward.

    x: [N, C, H, W] float32 (NCHW, as in PyTorch)
    w: [1, 2, K, K] float32 (torch OIHW layout of nn.Conv2d(2, 1, K, bias=False))
    """
    N, C, H, W = x.shape
    K = w.shape[-1]
    P = K // 2
    HW = H * W

    x = x.astype(jnp.float32)
    xf = x.reshape(N, C, HW)                    # free reshape (contiguous dims)

    # Fold the 1/C of the channel mean into the cin=0 weights, flatten to
    # (cin, kh, kw) scalar order for SMEM.
    w = w.astype(jnp.float32)
    w = w.at[:, 0, :, :].multiply(1.0 / C)
    w_flat = w.reshape(-1)                      # f32[2*K*K]

    # Per-kernel-column horizontal halo masks over the flat index (tiny input).
    col = jnp.arange(HW, dtype=jnp.int32) % W
    colmask = jnp.stack(
        [((col + (j - P) >= 0) & (col + (j - P) < W)).astype(jnp.float32)
         for j in range(K)], axis=0)            # (K, HW)

    # Flat zero-padded scratch geometry: interior at a lane-aligned offset,
    # halo of P*W + P zeros on both sides, width rounded up to 128 lanes.
    halo = P * W + P
    OFF = ((halo + 127) // 128) * 128
    SW = ((OFF + HW + halo + 127) // 128) * 128

    NB = _pick_batch_block(N, C, HW)
    grid = (N // NB,)

    kernel = functools.partial(_spatial_attention_kernel,
                               NB=NB, C=C, HW=HW, K=K, W=W, OFF=OFF)

    out_flat = pl.pallas_call(
        kernel,
        grid=grid,
        in_specs=[
            pl.BlockSpec(memory_space=pltpu.MemorySpace.SMEM),        # weights
            pl.BlockSpec((K, HW), lambda n: (0, 0)),                  # col masks
            pl.BlockSpec((NB, C, HW), lambda n: (n, 0, 0)),           # x (flat)
        ],
        out_specs=pl.BlockSpec((NB, C, HW), lambda n: (n, 0, 0)),
        out_shape=jax.ShapeDtypeStruct((N, C, HW), jnp.float32),
        scratch_shapes=[pltpu.VMEM((2, SW), jnp.float32)],
        compiler_params=pltpu.CompilerParams(
            dimension_semantics=("parallel",)),                       # megacore
    )(w_flat, colmask, xf)

    return out_flat.reshape(N, C, H, W)


if __name__ == "__main__":
    key = jax.random.PRNGKey(0)
    kx, kw = jax.random.split(key)

    N, C, H, W = 2, 4, 16, 16
    K = 7
    x = jax.random.normal(kx, (N, C, H, W), jnp.float32)
    fan_in = 2 * K * K
    bound = (1.0 / fan_in) ** 0.5
    w = jax.random.uniform(kw, (1, 2, K, K), jnp.float32,
                           minval=-bound, maxval=bound)

    fwd = jax.jit(spatial_attention)
    out = jax.block_until_ready(fwd(x, w))
    assert out.shape == (N, C, H, W), out.shape
    assert bool(jnp.all(jnp.isfinite(out)))

    # Pure-JAX reference (mirrors the PyTorch module) for a correctness check.
    P = K // 2
    avg = jnp.mean(x, axis=1, keepdims=True)
    mx = jnp.max(x, axis=1, keepdims=True)
    xc = jnp.concatenate([avg, mx], axis=1)
    conv = jax.lax.conv_general_dilated(
        xc, w, window_strides=(1, 1), padding=[(P, P), (P, P)],
        dimension_numbers=("NCHW", "OIHW", "NCHW"))
    ref = jax.nn.sigmoid(conv) * x
    assert bool(jnp.allclose(out, ref, atol=1e-4, rtol=1e-4)), \
        float(jnp.max(jnp.abs(out - ref)))

    print("KERNEL_OK")
</pallas_src>

<mosaic_0001>
module attributes {stable_mosaic.version = 11 : i64} {
  func.func @_spatial_attention_kernel(%arg0: i32, %arg1: memref<98xf32, #tpu.memory_space<smem>>, %arg2: memref<7x256xf32, #tpu.memory_space<vmem>>, %arg3: memref<1x4x256xf32, #tpu.memory_space<vmem>>, %arg4: memref<1x4x256xf32, #tpu.memory_space<vmem>>, %arg5: memref<2x512xf32, #tpu.memory_space<vmem>>) attributes {dimension_semantics = [#tpu.dimension_semantics<parallel>], iteration_bounds = array<i64: 2>, scalar_prefetch = 0 : i64, scratch_operands = 1 : i64, tpu.core_type = #tpu.core_type<tc>, window_params = [{transform_indices = @transform_0, window_bounds = array<i64: 98>}, {pipeline_mode = #tpu.pipeline_mode<synchronous>, transform_indices = @transform_1, window_bounds = array<i64: 7, 256>}, {transform_indices = @transform_2, window_bounds = array<i64: 1, 4, 256>}, {transform_indices = @transform_3, window_bounds = array<i64: 1, 4, 256>}]} {
    %cst = arith.constant 0.000000e+00 : f32
    %0 = vector.broadcast %cst : f32 to vector<2x512xf32>
    %c0 = arith.constant 0 : index
    %c0_0 = arith.constant 0 : index
    %1 = vector.load %arg5[%c0, %c0_0] : memref<2x512xf32, #tpu.memory_space<vmem>>, vector<2x512xf32>
    tpu.vector_store %arg5[%c0, %c0_0], %0 {strides = array<i32>} : memref<2x512xf32, #tpu.memory_space<vmem>>, vector<2x512xf32>,
    %c0_1 = arith.constant 0 : index
    %c0_2 = arith.constant 0 : index
    %c0_3 = arith.constant 0 : index
    %2 = vector.load %arg3[%c0_1, %c0_2, %c0_3] : memref<1x4x256xf32, #tpu.memory_space<vmem>>, vector<1x4x256xf32>
    %3 = vector.shape_cast %2 : vector<1x4x256xf32> to vector<4x256xf32>
    %cst_4 = arith.constant dense<0.000000e+00> : vector<256xf32>
    %4 = vector.multi_reduction <add>, %3, %cst_4 [0] : vector<4x256xf32> to vector<256xf32>
    %5 = vector.shape_cast %4 : vector<256xf32> to vector<1x256xf32>
    %cst_5 = arith.constant dense<0xFF800000> : vector<256xf32>
    %6 = vector.multi_reduction <maximumf>, %3, %cst_5 [0] : vector<4x256xf32> to vector<256xf32>
    %7 = vector.shape_cast %6 : vector<256xf32> to vector<1x256xf32>
    %c0_6 = arith.constant 0 : index
    %c128 = arith.constant 128 : index
    %8 = vector.load %arg5[%c0_6, %c128] : memref<2x512xf32, #tpu.memory_space<vmem>>, vector<1x256xf32>
    tpu.vector_store %arg5[%c0_6, %c128], %5 {strides = array<i32>} : memref<2x512xf32, #tpu.memory_space<vmem>>, vector<1x256xf32>,
    %c1 = arith.constant 1 : index
    %c128_7 = arith.constant 128 : index
    %9 = vector.load %arg5[%c1, %c128_7] : memref<2x512xf32, #tpu.memory_space<vmem>>, vector<1x256xf32>
    tpu.vector_store %arg5[%c1, %c128_7], %7 {strides = array<i32>} : memref<2x512xf32, #tpu.memory_space<vmem>>, vector<1x256xf32>,
    %c0_8 = arith.constant 0 : index
    %10 = memref.load %arg1[%c0_8] : memref<98xf32, #tpu.memory_space<smem>>
    %c0_9 = arith.constant 0 : index
    %c77 = arith.constant 77 : index
    %11 = vector.load %arg5[%c0_9, %c77] : memref<2x512xf32, #tpu.memory_space<vmem>>, vector<1x256xf32>
    %12 = vector.broadcast %10 : f32 to vector<1x256xf32>
    %13 = arith.mulf %12, %11 : vector<1x256xf32>
    %c7 = arith.constant 7 : index
    %14 = memref.load %arg1[%c7] : memref<98xf32, #tpu.memory_space<smem>>
    %c0_10 = arith.constant 0 : index
    %c93 = arith.constant 93 : index
    %15 = vector.load %arg5[%c0_10, %c93] : memref<2x512xf32, #tpu.memory_space<vmem>>, vector<1x256xf32>
    %16 = vector.broadcast %14 : f32 to vector<1x256xf32>
    %17 = arith.mulf %16, %15 : vector<1x256xf32>
    %18 = arith.addf %13, %17 : vector<1x256xf32>
    %c14 = arith.constant 14 : index
    %19 = memref.load %arg1[%c14] : memref<98xf32, #tpu.memory_space<smem>>
    %c0_11 = arith.constant 0 : index
    %c109 = arith.constant 109 : index
    %20 = vector.load %arg5[%c0_11, %c109] : memref<2x512xf32, #tpu.memory_space<vmem>>, vector<1x256xf32>
    %21 = vector.broadcast %19 : f32 to vector<1x256xf32>
    %22 = arith.mulf %21, %20 : vector<1x256xf32>
    %23 = arith.addf %18, %22 : vector<1x256xf32>
    %c21 = arith.constant 21 : index
    %24 = memref.load %arg1[%c21] : memref<98xf32, #tpu.memory_space<smem>>
    %c0_12 = arith.constant 0 : index
    %c125 = arith.constant 125 : index
    %25 = vector.load %arg5[%c0_12, %c125] : memref<2x512xf32, #tpu.memory_space<vmem>>, vector<1x256xf32>
    %26 = vector.broadcast %24 : f32 to vector<1x256xf32>
    %27 = arith.mulf %26, %25 : vector<1x256xf32>
    %28 = arith.addf %23, %27 : vector<1x256xf32>
    %c28 = arith.constant 28 : index
    %29 = memref.load %arg1[%c28] : memref<98xf32, #tpu.memory_space<smem>>
    %c0_13 = arith.constant 0 : index
    %c141 = arith.constant 141 : index
    %30 = vector.load %arg5[%c0_13, %c141] : memref<2x512xf32, #tpu.memory_space<vmem>>, vector<1x256xf32>
    %31 = vector.broadcast %29 : f32 to vector<1x256xf32>
    %32 = arith.mulf %31, %30 : vector<1x256xf32>
    %33 = arith.addf %28, %32 : vector<1x256xf32>
    %c35 = arith.constant 35 : index
    %34 = memref.load %arg1[%c35] : memref<98xf32, #tpu.memory_space<smem>>
    %c0_14 = arith.constant 0 : index
    %c157 = arith.constant 157 : index
    %35 = vector.load %arg5[%c0_14, %c157] : memref<2x512xf32, #tpu.memory_space<vmem>>, vector<1x256xf32>
    %36 = vector.broadcast %34 : f32 to vector<1x256xf32>
    %37 = arith.mulf %36, %35 : vector<1x256xf32>
    %38 = arith.addf %33, %37 : vector<1x256xf32>
    %c42 = arith.constant 42 : index
    %39 = memref.load %arg1[%c42] : memref<98xf32, #tpu.memory_space<smem>>
    %c0_15 = arith.constant 0 : index
    %c173 = arith.constant 173 : index
    %40 = vector.load %arg5[%c0_15, %c173] : memref<2x512xf32, #tpu.memory_space<vmem>>, vector<1x256xf32>
    %41 = vector.broadcast %39 : f32 to vector<1x256xf32>
    %42 = arith.mulf %41, %40 : vector<1x256xf32>
    %43 = arith.addf %38, %42 : vector<1x256xf32>
    %c49 = arith.constant 49 : index
    %44 = memref.load %arg1[%c49] : memref<98xf32, #tpu.memory_space<smem>>
    %c1_16 = arith.constant 1 : index
    %c77_17 = arith.constant 77 : index
    %45 = vector.load %arg5[%c1_16, %c77_17] : memref<2x512xf32, #tpu.memory_space<vmem>>, vector<1x256xf32>
    %46 = vector.broadcast %44 : f32 to vector<1x256xf32>
    %47 = arith.mulf %46, %45 : vector<1x256xf32>
    %48 = arith.addf %43, %47 : vector<1x256xf32>
    %c56 = arith.constant 56 : index
    %49 = memref.load %arg1[%c56] : memref<98xf32, #tpu.memory_space<smem>>
    %c1_18 = arith.constant 1 : index
    %c93_19 = arith.constant 93 : index
    %50 = vector.load %arg5[%c1_18, %c93_19] : memref<2x512xf32, #tpu.memory_space<vmem>>, vector<1x256xf32>
    %51 = vector.broadcast %49 : f32 to vector<1x256xf32>
    %52 = arith.mulf %51, %50 : vector<1x256xf32>
    %53 = arith.addf %48, %52 : vector<1x256xf32>
    %c63 = arith.constant 63 : index
    %54 = memref.load %arg1[%c63] : memref<98xf32, #tpu.memory_space<smem>>
    %c1_20 = arith.constant 1 : index
    %c109_21 = arith.constant 109 : index
    %55 = vector.load %arg5[%c1_20, %c109_21] : memref<2x512xf32, #tpu.memory_space<vmem>>, vector<1x256xf32>
    %56 = vector.broadcast %54 : f32 to vector<1x256xf32>
    %57 = arith.mulf %56, %55 : vector<1x256xf32>
    %58 = arith.addf %53, %57 : vector<1x256xf32>
    %c70 = arith.constant 70 : index
    %59 = memref.load %arg1[%c70] : memref<98xf32, #tpu.memory_space<smem>>
    %c1_22 = arith.constant 1 : index
    %c125_23 = arith.constant 125 : index
    %60 = vector.load %arg5[%c1_22, %c125_23] : memref<2x512xf32, #tpu.memory_space<vmem>>, vector<1x256xf32>
    %61 = vector.broadcast %59 : f32 to vector<1x256xf32>
    %62 = arith.mulf %61, %60 : vector<1x256xf32>
    %63 = arith.addf %58, %62 : vector<1x256xf32>
    %c77_24 = arith.constant 77 : index
    %64 = memref.load %arg1[%c77_24] : memref<98xf32, #tpu.memory_space<smem>>
    %c1_25 = arith.constant 1 : index
    %c141_26 = arith.constant 141 : index
    %65 = vector.load %arg5[%c1_25, %c141_26] : memref<2x512xf32, #tpu.memory_space<vmem>>, vector<1x256xf32>
    %66 = vector.broadcast %64 : f32 to vector<1x256xf32>
    %67 = arith.mulf %66, %65 : vector<1x256xf32>
    %68 = arith.addf %63, %67 : vector<1x256xf32>
    %c84 = arith.constant 84 : index
    %69 = memref.load %arg1[%c84] : memref<98xf32, #tpu.memory_space<smem>>
    %c1_27 = arith.constant 1 : index
    %c157_28 = arith.constant 157 : index
    %70 = vector.load %arg5[%c1_27, %c157_28] : memref<2x512xf32, #tpu.memory_space<vmem>>, vector<1x256xf32>
    %71 = vector.broadcast %69 : f32 to vector<1x256xf32>
    %72 = arith.mulf %71, %70 : vector<1x256xf32>
    %73 = arith.addf %68, %72 : vector<1x256xf32>
    %c91 = arith.constant 91 : index
    %74 = memref.load %arg1[%c91] : memref<98xf32, #tpu.memory_space<smem>>
    %c1_29 = arith.constant 1 : index
    %c173_30 = arith.constant 173 : index
    %75 = vector.load %arg5[%c1_29, %c173_30] : memref<2x512xf32, #tpu.memory_space<vmem>>, vector<1x256xf32>
    %76 = vector.broadcast %74 : f32 to vector<1x256xf32>
    %77 = arith.mulf %76, %75 : vector<1x256xf32>
    %78 = arith.addf %73, %77 : vector<1x256xf32>
    %c0_31 = arith.constant 0 : index
    %c0_32 = arith.constant 0 : index
    %79 = vector.load %arg2[%c0_31, %c0_32] : memref<7x256xf32, #tpu.memory_space<vmem>>, vector<1x256xf32>
    %80 = arith.mulf %78, %79 : vector<1x256xf32>
    %c1_33 = arith.constant 1 : index
    %81 = memref.load %arg1[%c1_33] : memref<98xf32, #tpu.memory_space<smem>>
    %c0_34 = arith.constant 0 : index
    %c78 = arith.constant 78 : index
    %82 = vector.load %arg5[%c0_34, %c78] : memref<2x512xf32, #tpu.memory_space<vmem>>, vector<1x256xf32>
    %83 = vector.broadcast %81 : f32 to vector<1x256xf32>
    %84 = arith.mulf %83, %82 : vector<1x256xf32>
    %c8 = arith.constant 8 : index
    %85 = memref.load %arg1[%c8] : memref<98xf32, #tpu.memory_space<smem>>
    %c0_35 = arith.constant 0 : index
    %c94 = arith.constant 94 : index
    %86 = vector.load %arg5[%c0_35, %c94] : memref<2x512xf32, #tpu.memory_space<vmem>>, vector<1x256xf32>
    %87 = vector.broadcast %85 : f32 to vector<1x256xf32>
    %88 = arith.mulf %87, %86 : vector<1x256xf32>
    %89 = arith.addf %84, %88 : vector<1x256xf32>
    %c15 = arith.constant 15 : index
    %90 = memref.load %arg1[%c15] : memref<98xf32, #tpu.memory_space<smem>>
    %c0_36 = arith.constant 0 : index
    %c110 = arith.constant 110 : index
    %91 = vector.load %arg5[%c0_36, %c110] : memref<2x512xf32, #tpu.memory_space<vmem>>, vector<1x256xf32>
    %92 = vector.broadcast %90 : f32 to vector<1x256xf32>
    %93 = arith.mulf %92, %91 : vector<1x256xf32>
    %94 = arith.addf %89, %93 : vector<1x256xf32>
    %c22 = arith.constant 22 : index
    %95 = memref.load %arg1[%c22] : memref<98xf32, #tpu.memory_space<smem>>
    %c0_37 = arith.constant 0 : index
    %c126 = arith.constant 126 : index
    %96 = vector.load %arg5[%c0_37, %c126] : memref<2x512xf32, #tpu.memory_space<vmem>>, vector<1x256xf32>
    %97 = vector.broadcast %95 : f32 to vector<1x256xf32>
    %98 = arith.mulf %97, %96 : vector<1x256xf32>
    %99 = arith.addf %94, %98 : vector<1x256xf32>
    %c29 = arith.constant 29 : index
    %100 = memref.load %arg1[%c29] : memref<98xf32, #tpu.memory_space<smem>>
    %c0_38 = arith.constant 0 : index
    %c142 = arith.constant 142 : index
    %101 = vector.load %arg5[%c0_38, %c142] : memref<2x512xf32, #tpu.memory_space<vmem>>, vector<1x256xf32>
    %102 = vector.broadcast %100 : f32 to vector<1x256xf32>
    %103 = arith.mulf %102, %101 : vector<1x256xf32>
    %104 = arith.addf %99, %103 : vector<1x256xf32>
    %c36 = arith.constant 36 : index
    %105 = memref.load %arg1[%c36] : memref<98xf32, #tpu.memory_space<smem>>
    %c0_39 = arith.constant 0 : index
    %c158 = arith.constant 158 : index
    %106 = vector.load %arg5[%c0_39, %c158] : memref<2x512xf32, #tpu.memory_space<vmem>>, vector<1x256xf32>
    %107 = vector.broadcast %105 : f32 to vector<1x256xf32>
    %108 = arith.mulf %107, %106 : vector<1x256xf32>
    %109 = arith.addf %104, %108 : vector<1x256xf32>
    %c43 = arith.constant 43 : index
    %110 = memref.load %arg1[%c43] : memref<98xf32, #tpu.memory_space<smem>>
    %c0_40 = arith.constant 0 : index
    %c174 = arith.constant 174 : index
    %111 = vector.load %arg5[%c0_40, %c174] : memref<2x512xf32, #tpu.memory_space<vmem>>, vector<1x256xf32>
    %112 = vector.broadcast %110 : f32 to vector<1x256xf32>
    %113 = arith.mulf %112, %111 : vector<1x256xf32>
    %114 = arith.addf %109, %113 : vector<1x256xf32>
    %c50 = arith.constant 50 : index
    %115 = memref.load %arg1[%c50] : memref<98xf32, #tpu.memory_space<smem>>
    %c1_41 = arith.constant 1 : index
    %c78_42 = arith.constant 78 : index
    %116 = vector.load %arg5[%c1_41, %c78_42] : memref<2x512xf32, #tpu.memory_space<vmem>>, vector<1x256xf32>
    %117 = vector.broadcast %115 : f32 to vector<1x256xf32>
    %118 = arith.mulf %117, %116 : vector<1x256xf32>
    %119 = arith.addf %114, %118 : vector<1x256xf32>
    %c57 = arith.constant 57 : index
    %120 = memref.load %arg1[%c57] : memref<98xf32, #tpu.memory_space<smem>>
    %c1_43 = arith.constant 1 : index
    %c94_44 = arith.constant 94 : index
    %121 = vector.load %arg5[%c1_43, %c94_44] : memref<2x512xf32, #tpu.memory_space<vmem>>, vector<1x256xf32>
    %122 = vector.broadcast %120 : f32 to vector<1x256xf32>
    %123 = arith.mulf %122, %121 : vector<1x256xf32>
    %124 = arith.addf %119, %123 : vector<1x256xf32>
    %c64 = arith.constant 64 : index
    %125 = memref.load %arg1[%c64] : memref<98xf32, #tpu.memory_space<smem>>
    %c1_45 = arith.constant 1 : index
    %c110_46 = arith.constant 110 : index
    %126 = vector.load %arg5[%c1_45, %c110_46] : memref<2x512xf32, #tpu.memory_space<vmem>>, vector<1x256xf32>
    %127 = vector.broadcast %125 : f32 to vector<1x256xf32>
    %128 = arith.mulf %127, %126 : vector<1x256xf32>
    %129 = arith.addf %124, %128 : vector<1x256xf32>
    %c71 = arith.constant 71 : index
    %130 = memref.load %arg1[%c71] : memref<98xf32, #tpu.memory_space<smem>>
    %c1_47 = arith.constant 1 : index
    %c126_48 = arith.constant 126 : index
    %131 = vector.load %arg5[%c1_47, %c126_48] : memref<2x512xf32, #tpu.memory_space<vmem>>, vector<1x256xf32>
    %132 = vector.broadcast %130 : f32 to vector<1x256xf32>
    %133 = arith.mulf %132, %131 : vector<1x256xf32>
    %134 = arith.addf %129, %133 : vector<1x256xf32>
    %c78_49 = arith.constant 78 : index
    %135 = memref.load %arg1[%c78_49] : memref<98xf32, #tpu.memory_space<smem>>
    %c1_50 = arith.constant 1 : index
    %c142_51 = arith.constant 142 : index
    %136 = vector.load %arg5[%c1_50, %c142_51] : memref<2x512xf32, #tpu.memory_space<vmem>>, vector<1x256xf32>
    %137 = vector.broadcast %135 : f32 to vector<1x256xf32>
    %138 = arith.mulf %137, %136 : vector<1x256xf32>
    %139 = arith.addf %134, %138 : vector<1x256xf32>
    %c85 = arith.constant 85 : index
    %140 = memref.load %arg1[%c85] : memref<98xf32, #tpu.memory_space<smem>>
    %c1_52 = arith.constant 1 : index
    %c158_53 = arith.constant 158 : index
    %141 = vector.load %arg5[%c1_52, %c158_53] : memref<2x512xf32, #tpu.memory_space<vmem>>, vector<1x256xf32>
    %142 = vector.broadcast %140 : f32 to vector<1x256xf32>
    %143 = arith.mulf %142, %141 : vector<1x256xf32>
    %144 = arith.addf %139, %143 : vector<1x256xf32>
    %c92 = arith.constant 92 : index
    %145 = memref.load %arg1[%c92] : memref<98xf32, #tpu.memory_space<smem>>
    %c1_54 = arith.constant 1 : index
    %c174_55 = arith.constant 174 : index
    %146 = vector.load %arg5[%c1_54, %c174_55] : memref<2x512xf32, #tpu.memory_space<vmem>>, vector<1x256xf32>
    %147 = vector.broadcast %145 : f32 to vector<1x256xf32>
    %148 = arith.mulf %147, %146 : vector<1x256xf32>
    %149 = arith.addf %144, %148 : vector<1x256xf32>
    %c1_56 = arith.constant 1 : index
    %c0_57 = arith.constant 0 : index
    %150 = vector.load %arg2[%c1_56, %c0_57] : memref<7x256xf32, #tpu.memory_space<vmem>>, vector<1x256xf32>
    %151 = arith.mulf %149, %150 : vector<1x256xf32>
    %152 = arith.addf %80, %151 : vector<1x256xf32>
    %c2 = arith.constant 2 : index
    %153 = memref.load %arg1[%c2] : memref<98xf32, #tpu.memory_space<smem>>
    %c0_58 = arith.constant 0 : index
    %c79 = arith.constant 79 : index
    %154 = vector.load %arg5[%c0_58, %c79] : memref<2x512xf32, #tpu.memory_space<vmem>>, vector<1x256xf32>
    %155 = vector.broadcast %153 : f32 to vector<1x256xf32>
    %156 = arith.mulf %155, %154 : vector<1x256xf32>
    %c9 = arith.constant 9 : index
    %157 = memref.load %arg1[%c9] : memref<98xf32, #tpu.memory_space<smem>>
    %c0_59 = arith.constant 0 : index
    %c95 = arith.constant 95 : index
    %158 = vector.load %arg5[%c0_59, %c95] : memref<2x512xf32, #tpu.memory_space<vmem>>, vector<1x256xf32>
    %159 = vector.broadcast %157 : f32 to vector<1x256xf32>
    %160 = arith.mulf %159, %158 : vector<1x256xf32>
    %161 = arith.addf %156, %160 : vector<1x256xf32>
    %c16 = arith.constant 16 : index
    %162 = memref.load %arg1[%c16] : memref<98xf32, #tpu.memory_space<smem>>
    %c0_60 = arith.constant 0 : index
    %c111 = arith.constant 111 : index
    %163 = vector.load %arg5[%c0_60, %c111] : memref<2x512xf32, #tpu.memory_space<vmem>>, vector<1x256xf32>
    %164 = vector.broadcast %162 : f32 to vector<1x256xf32>
    %165 = arith.mulf %164, %163 : vector<1x256xf32>
    %166 = arith.addf %161, %165 : vector<1x256xf32>
    %c23 = arith.constant 23 : index
    %167 = memref.load %arg1[%c23] : memref<98xf32, #tpu.memory_space<smem>>
    %c0_61 = arith.constant 0 : index
    %c127 = arith.constant 127 : index
    %168 = vector.load %arg5[%c0_61, %c127] : memref<2x512xf32, #tpu.memory_space<vmem>>, vector<1x256xf32>
    %169 = vector.broadcast %167 : f32 to vector<1x256xf32>
    %170 = arith.mulf %169, %168 : vector<1x256xf32>
    %171 = arith.addf %166, %170 : vector<1x256xf32>
    %c30 = arith.constant 30 : index
    %172 = memref.load %arg1[%c30] : memref<98xf32, #tpu.memory_space<smem>>
    %c0_62 = arith.constant 0 : index
    %c143 = arith.constant 143 : index
    %173 = vector.load %arg5[%c0_62, %c143] : memref<2x512xf32, #tpu.memory_space<vmem>>, vector<1x256xf32>
    %174 = vector.broadcast %172 : f32 to vector<1x256xf32>
    %175 = arith.mulf %174, %173 : vector<1x256xf32>
    %176 = arith.addf %171, %175 : vector<1x256xf32>
    %c37 = arith.constant 37 : index
    %177 = memref.load %arg1[%c37] : memref<98xf32, #tpu.memory_space<smem>>
    %c0_63 = arith.constant 0 : index
    %c159 = arith.constant 159 : index
    %178 = vector.load %arg5[%c0_63, %c159] : memref<2x512xf32, #tpu.memory_space<vmem>>, vector<1x256xf32>
    %179 = vector.broadcast %177 : f32 to vector<1x256xf32>
    %180 = arith.mulf %179, %178 : vector<1x256xf32>
    %181 = arith.addf %176, %180 : vector<1x256xf32>
    %c44 = arith.constant 44 : index
    %182 = memref.load %arg1[%c44] : memref<98xf32, #tpu.memory_space<smem>>
    %c0_64 = arith.constant 0 : index
    %c175 = arith.constant 175 : index
    %183 = vector.load %arg5[%c0_64, %c175] : memref<2x512xf32, #tpu.memory_space<vmem>>, vector<1x256xf32>
    %184 = vector.broadcast %182 : f32 to vector<1x256xf32>
    %185 = arith.mulf %184, %183 : vector<1x256xf32>
    %186 = arith.addf %181, %185 : vector<1x256xf32>
    %c51 = arith.constant 51 : index
    %187 = memref.load %arg1[%c51] : memref<98xf32, #tpu.memory_space<smem>>
    %c1_65 = arith.constant 1 : index
    %c79_66 = arith.constant 79 : index
    %188 = vector.load %arg5[%c1_65, %c79_66] : memref<2x512xf32, #tpu.memory_space<vmem>>, vector<1x256xf32>
    %189 = vector.broadcast %187 : f32 to vector<1x256xf32>
    %190 = arith.mulf %189, %188 : vector<1x256xf32>
    %191 = arith.addf %186, %190 : vector<1x256xf32>
    %c58 = arith.constant 58 : index
    %192 = memref.load %arg1[%c58] : memref<98xf32, #tpu.memory_space<smem>>
    %c1_67 = arith.constant 1 : index
    %c95_68 = arith.constant 95 : index
    %193 = vector.load %arg5[%c1_67, %c95_68] : memref<2x512xf32, #tpu.memory_space<vmem>>, vector<1x256xf32>
    %194 = vector.broadcast %192 : f32 to vector<1x256xf32>
    %195 = arith.mulf %194, %193 : vector<1x256xf32>
    %196 = arith.addf %191, %195 : vector<1x256xf32>
    %c65 = arith.constant 65 : index
    %197 = memref.load %arg1[%c65] : memref<98xf32, #tpu.memory_space<smem>>
    %c1_69 = arith.constant 1 : index
    %c111_70 = arith.constant 111 : index
    %198 = vector.load %arg5[%c1_69, %c111_70] : memref<2x512xf32, #tpu.memory_space<vmem>>, vector<1x256xf32>
    %199 = vector.broadcast %197 : f32 to vector<1x256xf32>
    %200 = arith.mulf %199, %198 : vector<1x256xf32>
    %201 = arith.addf %196, %200 : vector<1x256xf32>
    %c72 = arith.constant 72 : index
    %202 = memref.load %arg1[%c72] : memref<98xf32, #tpu.memory_space<smem>>
    %c1_71 = arith.constant 1 : index
    %c127_72 = arith.constant 127 : index
    %203 = vector.load %arg5[%c1_71, %c127_72] : memref<2x512xf32, #tpu.memory_space<vmem>>, vector<1x256xf32>
    %204 = vector.broadcast %202 : f32 to vector<1x256xf32>
    %205 = arith.mulf %204, %203 : vector<1x256xf32>
    %206 = arith.addf %201, %205 : vector<1x256xf32>
    %c79_73 = arith.constant 79 : index
    %207 = memref.load %arg1[%c79_73] : memref<98xf32, #tpu.memory_space<smem>>
    %c1_74 = arith.constant 1 : index
    %c143_75 = arith.constant 143 : index
    %208 = vector.load %arg5[%c1_74, %c143_75] : memref<2x512xf32, #tpu.memory_space<vmem>>, vector<1x256xf32>
    %209 = vector.broadcast %207 : f32 to vector<1x256xf32>
    %210 = arith.mulf %209, %208 : vector<1x256xf32>
    %211 = arith.addf %206, %210 : vector<1x256xf32>
    %c86 = arith.constant 86 : index
    %212 = memref.load %arg1[%c86] : memref<98xf32, #tpu.memory_space<smem>>
    %c1_76 = arith.constant 1 : index
    %c159_77 = arith.constant 159 : index
    %213 = vector.load %arg5[%c1_76, %c159_77] : memref<2x512xf32, #tpu.memory_space<vmem>>, vector<1x256xf32>
    %214 = vector.broadcast %212 : f32 to vector<1x256xf32>
    %215 = arith.mulf %214, %213 : vector<1x256xf32>
    %216 = arith.addf %211, %215 : vector<1x256xf32>
    %c93_78 = arith.constant 93 : index
    %217 = memref.load %arg1[%c93_78] : memref<98xf32, #tpu.memory_space<smem>>
    %c1_79 = arith.constant 1 : index
    %c175_80 = arith.constant 175 : index
    %218 = vector.load %arg5[%c1_79, %c175_80] : memref<2x512xf32, #tpu.memory_space<vmem>>, vector<1x256xf32>
    %219 = vector.broadcast %217 : f32 to vector<1x256xf32>
    %220 = arith.mulf %219, %218 : vector<1x256xf32>
    %221 = arith.addf %216, %220 : vector<1x256xf32>
    %c2_81 = arith.constant 2 : index
    %c0_82 = arith.constant 0 : index
    %222 = vector.load %arg2[%c2_81, %c0_82] : memref<7x256xf32, #tpu.memory_space<vmem>>, vector<1x256xf32>
    %223 = arith.mulf %221, %222 : vector<1x256xf32>
    %224 = arith.addf %152, %223 : vector<1x256xf32>
    %c3 = arith.constant 3 : index
    %225 = memref.load %arg1[%c3] : memref<98xf32, #tpu.memory_space<smem>>
    %c0_83 = arith.constant 0 : index
    %c80 = arith.constant 80 : index
    %226 = vector.load %arg5[%c0_83, %c80] : memref<2x512xf32, #tpu.memory_space<vmem>>, vector<1x256xf32>
    %227 = vector.broadcast %225 : f32 to vector<1x256xf32>
    %228 = arith.mulf %227, %226 : vector<1x256xf32>
    %c10 = arith.constant 10 : index
    %229 = memref.load %arg1[%c10] : memref<98xf32, #tpu.memory_space<smem>>
    %c0_84 = arith.constant 0 : index
    %c96 = arith.constant 96 : index
    %230 = vector.load %arg5[%c0_84, %c96] : memref<2x512xf32, #tpu.memory_space<vmem>>, vector<1x256xf32>
    %231 = vector.broadcast %229 : f32 to vector<1x256xf32>
    %232 = arith.mulf %231, %230 : vector<1x256xf32>
    %233 = arith.addf %228, %232 : vector<1x256xf32>
    %c17 = arith.constant 17 : index
    %234 = memref.load %arg1[%c17] : memref<98xf32, #tpu.memory_space<smem>>
    %c0_85 = arith.constant 0 : index
    %c112 = arith.constant 112 : index
    %235 = vector.load %arg5[%c0_85, %c112] : memref<2x512xf32, #tpu.memory_space<vmem>>, vector<1x256xf32>
    %236 = vector.broadcast %234 : f32 to vector<1x256xf32>
    %237 = arith.mulf %236, %235 : vector<1x256xf32>
    %238 = arith.addf %233, %237 : vector<1x256xf32>
    %c24 = arith.constant 24 : index
    %239 = memref.load %arg1[%c24] : memref<98xf32, #tpu.memory_space<smem>>
    %c0_86 = arith.constant 0 : index
    %c128_87 = arith.constant 128 : index
    %240 = vector.load %arg5[%c0_86, %c128_87] : memref<2x512xf32, #tpu.memory_space<vmem>>, vector<1x256xf32>
    %241 = vector.broadcast %239 : f32 to vector<1x256xf32>
    %242 = arith.mulf %241, %240 : vector<1x256xf32>
    %243 = arith.addf %238, %242 : vector<1x256xf32>
    %c31 = arith.constant 31 : index
    %244 = memref.load %arg1[%c31] : memref<98xf32, #tpu.memory_space<smem>>
    %c0_88 = arith.constant 0 : index
    %c144 = arith.constant 144 : index
    %245 = vector.load %arg5[%c0_88, %c144] : memref<2x512xf32, #tpu.memory_space<vmem>>, vector<1x256xf32>
    %246 = vector.broadcast %244 : f32 to vector<1x256xf32>
    %247 = arith.mulf %246, %245 : vector<1x256xf32>
    %248 = arith.addf %243, %247 : vector<1x256xf32>
    %c38 = arith.constant 38 : index
    %249 = memref.load %arg1[%c38] : memref<98xf32, #tpu.memory_space<smem>>
    %c0_89 = arith.constant 0 : index
    %c160 = arith.constant 160 : index
    %250 = vector.load %arg5[%c0_89, %c160] : memref<2x512xf32, #tpu.memory_space<vmem>>, vector<1x256xf32>
    %251 = vector.broadcast %249 : f32 to vector<1x256xf32>
    %252 = arith.mulf %251, %250 : vector<1x256xf32>
    %253 = arith.addf %248, %252 : vector<1x256xf32>
    %c45 = arith.constant 45 : index
    %254 = memref.load %arg1[%c45] : memref<98xf32, #tpu.memory_space<smem>>
    %c0_90 = arith.constant 0 : index
    %c176 = arith.constant 176 : index
    %255 = vector.load %arg5[%c0_90, %c176] : memref<2x512xf32, #tpu.memory_space<vmem>>, vector<1x256xf32>
    %256 = vector.broadcast %254 : f32 to vector<1x256xf32>
    %257 = arith.mulf %256, %255 : vector<1x256xf32>
    %258 = arith.addf %253, %257 : vector<1x256xf32>
    %c52 = arith.constant 52 : index
    %259 = memref.load %arg1[%c52] : memref<98xf32, #tpu.memory_space<smem>>
    %c1_91 = arith.constant 1 : index
    %c80_92 = arith.constant 80 : index
    %260 = vector.load %arg5[%c1_91, %c80_92] : memref<2x512xf32, #tpu.memory_space<vmem>>, vector<1x256xf32>
    %261 = vector.broadcast %259 : f32 to vector<1x256xf32>
    %262 = arith.mulf %261, %260 : vector<1x256xf32>
    %263 = arith.addf %258, %262 : vector<1x256xf32>
    %c59 = arith.constant 59 : index
    %264 = memref.load %arg1[%c59] : memref<98xf32, #tpu.memory_space<smem>>
    %c1_93 = arith.constant 1 : index
    %c96_94 = arith.constant 96 : index
    %265 = vector.load %arg5[%c1_93, %c96_94] : memref<2x512xf32, #tpu.memory_space<vmem>>, vector<1x256xf32>
    %266 = vector.broadcast %264 : f32 to vector<1x256xf32>
    %267 = arith.mulf %266, %265 : vector<1x256xf32>
    %268 = arith.addf %263, %267 : vector<1x256xf32>
    %c66 = arith.constant 66 : index
    %269 = memref.load %arg1[%c66] : memref<98xf32, #tpu.memory_space<smem>>
    %c1_95 = arith.constant 1 : index
    %c112_96 = arith.constant 112 : index
    %270 = vector.load %arg5[%c1_95, %c112_96] : memref<2x512xf32, #tpu.memory_space<vmem>>, vector<1x256xf32>
    %271 = vector.broadcast %269 : f32 to vector<1x256xf32>
    %272 = arith.mulf %271, %270 : vector<1x256xf32>
    %273 = arith.addf %268, %272 : vector<1x256xf32>
    %c73 = arith.constant 73 : index
    %274 = memref.load %arg1[%c73] : memref<98xf32, #tpu.memory_space<smem>>
    %c1_97 = arith.constant 1 : index
    %c128_98 = arith.constant 128 : index
    %275 = vector.load %arg5[%c1_97, %c128_98] : memref<2x512xf32, #tpu.memory_space<vmem>>, vector<1x256xf32>
    %276 = vector.broadcast %274 : f32 to vector<1x256xf32>
    %277 = arith.mulf %276, %275 : vector<1x256xf32>
    %278 = arith.addf %273, %277 : vector<1x256xf32>
    %c80_99 = arith.constant 80 : index
    %279 = memref.load %arg1[%c80_99] : memref<98xf32, #tpu.memory_space<smem>>
    %c1_100 = arith.constant 1 : index
    %c144_101 = arith.constant 144 : index
    %280 = vector.load %arg5[%c1_100, %c144_101] : memref<2x512xf32, #tpu.memory_space<vmem>>, vector<1x256xf32>
    %281 = vector.broadcast %279 : f32 to vector<1x256xf32>
    %282 = arith.mulf %281, %280 : vector<1x256xf32>
    %283 = arith.addf %278, %282 : vector<1x256xf32>
    %c87 = arith.constant 87 : index
    %284 = memref.load %arg1[%c87] : memref<98xf32, #tpu.memory_space<smem>>
    %c1_102 = arith.constant 1 : index
    %c160_103 = arith.constant 160 : index
    %285 = vector.load %arg5[%c1_102, %c160_103] : memref<2x512xf32, #tpu.memory_space<vmem>>, vector<1x256xf32>
    %286 = vector.broadcast %284 : f32 to vector<1x256xf32>
    %287 = arith.mulf %286, %285 : vector<1x256xf32>
    %288 = arith.addf %283, %287 : vector<1x256xf32>
    %c94_104 = arith.constant 94 : index
    %289 = memref.load %arg1[%c94_104] : memref<98xf32, #tpu.memory_space<smem>>
    %c1_105 = arith.constant 1 : index
    %c176_106 = arith.constant 176 : index
    %290 = vector.load %arg5[%c1_105, %c176_106] : memref<2x512xf32, #tpu.memory_space<vmem>>, vector<1x256xf32>
    %291 = vector.broadcast %289 : f32 to vector<1x256xf32>
    %292 = arith.mulf %291, %290 : vector<1x256xf32>
    %293 = arith.addf %288, %292 : vector<1x256xf32>
    %c3_107 = arith.constant 3 : index
    %c0_108 = arith.constant 0 : index
    %294 = vector.load %arg2[%c3_107, %c0_108] : memref<7x256xf32, #tpu.memory_space<vmem>>, vector<1x256xf32>
    %295 = arith.mulf %293, %294 : vector<1x256xf32>
    %296 = arith.addf %224, %295 : vector<1x256xf32>
    %c4 = arith.constant 4 : index
    %297 = memref.load %arg1[%c4] : memref<98xf32, #tpu.memory_space<smem>>
    %c0_109 = arith.constant 0 : index
    %c81 = arith.constant 81 : index
    %298 = vector.load %arg5[%c0_109, %c81] : memref<2x512xf32, #tpu.memory_space<vmem>>, vector<1x256xf32>
    %299 = vector.broadcast %297 : f32 to vector<1x256xf32>
    %300 = arith.mulf %299, %298 : vector<1x256xf32>
    %c11 = arith.constant 11 : index
    %301 = memref.load %arg1[%c11] : memref<98xf32, #tpu.memory_space<smem>>
    %c0_110 = arith.constant 0 : index
    %c97 = arith.constant 97 : index
    %302 = vector.load %arg5[%c0_110, %c97] : memref<2x512xf32, #tpu.memory_space<vmem>>, vector<1x256xf32>
    %303 = vector.broadcast %301 : f32 to vector<1x256xf32>
    %304 = arith.mulf %303, %302 : vector<1x256xf32>
    %305 = arith.addf %300, %304 : vector<1x256xf32>
    %c18 = arith.constant 18 : index
    %306 = memref.load %arg1[%c18] : memref<98xf32, #tpu.memory_space<smem>>
    %c0_111 = arith.constant 0 : index
    %c113 = arith.constant 113 : index
    %307 = vector.load %arg5[%c0_111, %c113] : memref<2x512xf32, #tpu.memory_space<vmem>>, vector<1x256xf32>
    %308 = vector.broadcast %306 : f32 to vector<1x256xf32>
    %309 = arith.mulf %308, %307 : vector<1x256xf32>
    %310 = arith.addf %305, %309 : vector<1x256xf32>
    %c25 = arith.constant 25 : index
    %311 = memref.load %arg1[%c25] : memref<98xf32, #tpu.memory_space<smem>>
    %c0_112 = arith.constant 0 : index
    %c129 = arith.constant 129 : index
    %312 = vector.load %arg5[%c0_112, %c129] : memref<2x512xf32, #tpu.memory_space<vmem>>, vector<1x256xf32>
    %313 = vector.broadcast %311 : f32 to vector<1x256xf32>
    %314 = arith.mulf %313, %312 : vector<1x256xf32>
    %315 = arith.addf %310, %314 : vector<1x256xf32>
    %c32 = arith.constant 32 : index
    %316 = memref.load %arg1[%c32] : memref<98xf32, #tpu.memory_space<smem>>
    %c0_113 = arith.constant 0 : index
    %c145 = arith.constant 145 : index
    %317 = vector.load %arg5[%c0_113, %c145] : memref<2x512xf32, #tpu.memory_space<vmem>>, vector<1x256xf32>
    %318 = vector.broadcast %316 : f32 to vector<1x256xf32>
    %319 = arith.mulf %318, %317 : vector<1x256xf32>
    %320 = arith.addf %315, %319 : vector<1x256xf32>
    %c39 = arith.constant 39 : index
    %321 = memref.load %arg1[%c39] : memref<98xf32, #tpu.memory_space<smem>>
    %c0_114 = arith.constant 0 : index
    %c161 = arith.constant 161 : index
    %322 = vector.load %arg5[%c0_114, %c161] : memref<2x512xf32, #tpu.memory_space<vmem>>, vector<1x256xf32>
    %323 = vector.broadcast %321 : f32 to vector<1x256xf32>
    %324 = arith.mulf %323, %322 : vector<1x256xf32>
    %325 = arith.addf %320, %324 : vector<1x256xf32>
    %c46 = arith.constant 46 : index
    %326 = memref.load %arg1[%c46] : memref<98xf32, #tpu.memory_space<smem>>
    %c0_115 = arith.constant 0 : index
    %c177 = arith.constant 177 : index
    %327 = vector.load %arg5[%c0_115, %c177] : memref<2x512xf32, #tpu.memory_space<vmem>>, vector<1x256xf32>
    %328 = vector.broadcast %326 : f32 to vector<1x256xf32>
    %329 = arith.mulf %328, %327 : vector<1x256xf32>
    %330 = arith.addf %325, %329 : vector<1x256xf32>
    %c53 = arith.constant 53 : index
    %331 = memref.load %arg1[%c53] : memref<98xf32, #tpu.memory_space<smem>>
    %c1_116 = arith.constant 1 : index
    %c81_117 = arith.constant 81 : index
    %332 = vector.load %arg5[%c1_116, %c81_117] : memref<2x512xf32, #tpu.memory_space<vmem>>, vector<1x256xf32>
    %333 = vector.broadcast %331 : f32 to vector<1x256xf32>
    %334 = arith.mulf %333, %332 : vector<1x256xf32>
    %335 = arith.addf %330, %334 : vector<1x256xf32>
    %c60 = arith.constant 60 : index
    %336 = memref.load %arg1[%c60] : memref<98xf32, #tpu.memory_space<smem>>
    %c1_118 = arith.constant 1 : index
    %c97_119 = arith.constant 97 : index
    %337 = vector.load %arg5[%c1_118, %c97_119] : memref<2x512xf32, #tpu.memory_space<vmem>>, vector<1x256xf32>
    %338 = vector.broadcast %336 : f32 to vector<1x256xf32>
    %339 = arith.mulf %338, %337 : vector<1x256xf32>
    %340 = arith.addf %335, %339 : vector<1x256xf32>
    %c67 = arith.constant 67 : index
    %341 = memref.load %arg1[%c67] : memref<98xf32, #tpu.memory_space<smem>>
    %c1_120 = arith.constant 1 : index
    %c113_121 = arith.constant 113 : index
    %342 = vector.load %arg5[%c1_120, %c113_121] : memref<2x512xf32, #tpu.memory_space<vmem>>, vector<1x256xf32>
    %343 = vector.broadcast %341 : f32 to vector<1x256xf32>
    %344 = arith.mulf %343, %342 : vector<1x256xf32>
    %345 = arith.addf %340, %344 : vector<1x256xf32>
    %c74 = arith.constant 74 : index
    %346 = memref.load %arg1[%c74] : memref<98xf32, #tpu.memory_space<smem>>
    %c1_122 = arith.constant 1 : index
    %c129_123 = arith.constant 129 : index
    %347 = vector.load %arg5[%c1_122, %c129_123] : memref<2x512xf32, #tpu.memory_space<vmem>>, vector<1x256xf32>
    %348 = vector.broadcast %346 : f32 to vector<1x256xf32>
    %349 = arith.mulf %348, %347 : vector<1x256xf32>
    %350 = arith.addf %345, %349 : vector<1x256xf32>
    %c81_124 = arith.constant 81 : index
    %351 = memref.load %arg1[%c81_124] : memref<98xf32, #tpu.memory_space<smem>>
    %c1_125 = arith.constant 1 : index
    %c145_126 = arith.constant 145 : index
    %352 = vector.load %arg5[%c1_125, %c145_126] : memref<2x512xf32, #tpu.memory_space<vmem>>, vector<1x256xf32>
    %353 = vector.broadcast %351 : f32 to vector<1x256xf32>
    %354 = arith.mulf %353, %352 : vector<1x256xf32>
    %355 = arith.addf %350, %354 : vector<1x256xf32>
    %c88 = arith.constant 88 : index
    %356 = memref.load %arg1[%c88] : memref<98xf32, #tpu.memory_space<smem>>
    %c1_127 = arith.constant 1 : index
    %c161_128 = arith.constant 161 : index
    %357 = vector.load %arg5[%c1_127, %c161_128] : memref<2x512xf32, #tpu.memory_space<vmem>>, vector<1x256xf32>
    %358 = vector.broadcast %356 : f32 to vector<1x256xf32>
    %359 = arith.mulf %358, %357 : vector<1x256xf32>
    %360 = arith.addf %355, %359 : vector<1x256xf32>
    %c95_129 = arith.constant 95 : index
    %361 = memref.load %arg1[%c95_129] : memref<98xf32, #tpu.memory_space<smem>>
    %c1_130 = arith.constant 1 : index
    %c177_131 = arith.constant 177 : index
    %362 = vector.load %arg5[%c1_130, %c177_131] : memref<2x512xf32, #tpu.memory_space<vmem>>, vector<1x256xf32>
    %363 = vector.broadcast %361 : f32 to vector<1x256xf32>
    %364 = arith.mulf %363, %362 : vector<1x256xf32>
    %365 = arith.addf %360, %364 : vector<1x256xf32>
    %c4_132 = arith.constant 4 : index
    %c0_133 = arith.constant 0 : index
    %366 = vector.load %arg2[%c4_132, %c0_133] : memref<7x256xf32, #tpu.memory_space<vmem>>, vector<1x256xf32>
    %367 = arith.mulf %365, %366 : vector<1x256xf32>
    %368 = arith.addf %296, %367 : vector<1x256xf32>
    %c5 = arith.constant 5 : index
    %369 = memref.load %arg1[%c5] : memref<98xf32, #tpu.memory_space<smem>>
    %c0_134 = arith.constant 0 : index
    %c82 = arith.constant 82 : index
    %370 = vector.load %arg5[%c0_134, %c82] : memref<2x512xf32, #tpu.memory_space<vmem>>, vector<1x256xf32>
    %371 = vector.broadcast %369 : f32 to vector<1x256xf32>
    %372 = arith.mulf %371, %370 : vector<1x256xf32>
    %c12 = arith.constant 12 : index
    %373 = memref.load %arg1[%c12] : memref<98xf32, #tpu.memory_space<smem>>
    %c0_135 = arith.constant 0 : index
    %c98 = arith.constant 98 : index
    %374 = vector.load %arg5[%c0_135, %c98] : memref<2x512xf32, #tpu.memory_space<vmem>>, vector<1x256xf32>
    %375 = vector.broadcast %373 : f32 to vector<1x256xf32>
    %376 = arith.mulf %375, %374 : vector<1x256xf32>
    %377 = arith.addf %372, %376 : vector<1x256xf32>
    %c19 = arith.constant 19 : index
    %378 = memref.load %arg1[%c19] : memref<98xf32, #tpu.memory_space<smem>>
    %c0_136 = arith.constant 0 : index
    %c114 = arith.constant 114 : index
    %379 = vector.load %arg5[%c0_136, %c114] : memref<2x512xf32, #tpu.memory_space<vmem>>, vector<1x256xf32>
    %380 = vector.broadcast %378 : f32 to vector<1x256xf32>
    %381 = arith.mulf %380, %379 : vector<1x256xf32>
    %382 = arith.addf %377, %381 : vector<1x256xf32>
    %c26 = arith.constant 26 : index
    %383 = memref.load %arg1[%c26] : memref<98xf32, #tpu.memory_space<smem>>
    %c0_137 = arith.constant 0 : index
    %c130 = arith.constant 130 : index
    %384 = vector.load %arg5[%c0_137, %c130] : memref<2x512xf32, #tpu.memory_space<vmem>>, vector<1x256xf32>
    %385 = vector.broadcast %383 : f32 to vector<1x256xf32>
    %386 = arith.mulf %385, %384 : vector<1x256xf32>
    %387 = arith.addf %382, %386 : vector<1x256xf32>
    %c33 = arith.constant 33 : index
    %388 = memref.load %arg1[%c33] : memref<98xf32, #tpu.memory_space<smem>>
    %c0_138 = arith.constant 0 : index
    %c146 = arith.constant 146 : index
    %389 = vector.load %arg5[%c0_138, %c146] : memref<2x512xf32, #tpu.memory_space<vmem>>, vector<1x256xf32>
    %390 = vector.broadcast %388 : f32 to vector<1x256xf32>
    %391 = arith.mulf %390, %389 : vector<1x256xf32>
    %392 = arith.addf %387, %391 : vector<1x256xf32>
    %c40 = arith.constant 40 : index
    %393 = memref.load %arg1[%c40] : memref<98xf32, #tpu.memory_space<smem>>
    %c0_139 = arith.constant 0 : index
    %c162 = arith.constant 162 : index
    %394 = vector.load %arg5[%c0_139, %c162] : memref<2x512xf32, #tpu.memory_space<vmem>>, vector<1x256xf32>
    %395 = vector.broadcast %393 : f32 to vector<1x256xf32>
    %396 = arith.mulf %395, %394 : vector<1x256xf32>
    %397 = arith.addf %392, %396 : vector<1x256xf32>
    %c47 = arith.constant 47 : index
    %398 = memref.load %arg1[%c47] : memref<98xf32, #tpu.memory_space<smem>>
    %c0_140 = arith.constant 0 : index
    %c178 = arith.constant 178 : index
    %399 = vector.load %arg5[%c0_140, %c178] : memref<2x512xf32, #tpu.memory_space<vmem>>, vector<1x256xf32>
    %400 = vector.broadcast %398 : f32 to vector<1x256xf32>
    %401 = arith.mulf %400, %399 : vector<1x256xf32>
    %402 = arith.addf %397, %401 : vector<1x256xf32>
    %c54 = arith.constant 54 : index
    %403 = memref.load %arg1[%c54] : memref<98xf32, #tpu.memory_space<smem>>
    %c1_141 = arith.constant 1 : index
    %c82_142 = arith.constant 82 : index
    %404 = vector.load %arg5[%c1_141, %c82_142] : memref<2x512xf32, #tpu.memory_space<vmem>>, vector<1x256xf32>
    %405 = vector.broadcast %403 : f32 to vector<1x256xf32>
    %406 = arith.mulf %405, %404 : vector<1x256xf32>
    %407 = arith.addf %402, %406 : vector<1x256xf32>
    %c61 = arith.constant 61 : index
    %408 = memref.load %arg1[%c61] : memref<98xf32, #tpu.memory_space<smem>>
    %c1_143 = arith.constant 1 : index
    %c98_144 = arith.constant 98 : index
    %409 = vector.load %arg5[%c1_143, %c98_144] : memref<2x512xf32, #tpu.memory_space<vmem>>, vector<1x256xf32>
    %410 = vector.broadcast %408 : f32 to vector<1x256xf32>
    %411 = arith.mulf %410, %409 : vector<1x256xf32>
    %412 = arith.addf %407, %411 : vector<1x256xf32>
    %c68 = arith.constant 68 : index
    %413 = memref.load %arg1[%c68] : memref<98xf32, #tpu.memory_space<smem>>
    %c1_145 = arith.constant 1 : index
    %c114_146 = arith.constant 114 : index
    %414 = vector.load %arg5[%c1_145, %c114_146] : memref<2x512xf32, #tpu.memory_space<vmem>>, vector<1x256xf32>
    %415 = vector.broadcast %413 : f32 to vector<1x256xf32>
    %416 = arith.mulf %415, %414 : vector<1x256xf32>
    %417 = arith.addf %412, %416 : vector<1x256xf32>
    %c75 = arith.constant 75 : index
    %418 = memref.load %arg1[%c75] : memref<98xf32, #tpu.memory_space<smem>>
    %c1_147 = arith.constant 1 : index
    %c130_148 = arith.constant 130 : index
    %419 = vector.load %arg5[%c1_147, %c130_148] : memref<2x512xf32, #tpu.memory_space<vmem>>, vector<1x256xf32>
    %420 = vector.broadcast %418 : f32 to vector<1x256xf32>
    %421 = arith.mulf %420, %419 : vector<1x256xf32>
    %422 = arith.addf %417, %421 : vector<1x256xf32>
    %c82_149 = arith.constant 82 : index
    %423 = memref.load %arg1[%c82_149] : memref<98xf32, #tpu.memory_space<smem>>
    %c1_150 = arith.constant 1 : index
    %c146_151 = arith.constant 146 : index
    %424 = vector.load %arg5[%c1_150, %c146_151] : memref<2x512xf32, #tpu.memory_space<vmem>>, vector<1x256xf32>
    %425 = vector.broadcast %423 : f32 to vector<1x256xf32>
    %426 = arith.mulf %425, %424 : vector<1x256xf32>
    %427 = arith.addf %422, %426 : vector<1x256xf32>
    %c89 = arith.constant 89 : index
    %428 = memref.load %arg1[%c89] : memref<98xf32, #tpu.memory_space<smem>>
    %c1_152 = arith.constant 1 : index
    %c162_153 = arith.constant 162 : index
    %429 = vector.load %arg5[%c1_152, %c162_153] : memref<2x512xf32, #tpu.memory_space<vmem>>, vector<1x256xf32>
    %430 = vector.broadcast %428 : f32 to vector<1x256xf32>
    %431 = arith.mulf %430, %429 : vector<1x256xf32>
    %432 = arith.addf %427, %431 : vector<1x256xf32>
    %c96_154 = arith.constant 96 : index
    %433 = memref.load %arg1[%c96_154] : memref<98xf32, #tpu.memory_space<smem>>
    %c1_155 = arith.constant 1 : index
    %c178_156 = arith.constant 178 : index
    %434 = vector.load %arg5[%c1_155, %c178_156] : memref<2x512xf32, #tpu.memory_space<vmem>>, vector<1x256xf32>
    %435 = vector.broadcast %433 : f32 to vector<1x256xf32>
    %436 = arith.mulf %435, %434 : vector<1x256xf32>
    %437 = arith.addf %432, %436 : vector<1x256xf32>
    %c5_157 = arith.constant 5 : index
    %c0_158 = arith.constant 0 : index
    %438 = vector.load %arg2[%c5_157, %c0_158] : memref<7x256xf32, #tpu.memory_space<vmem>>, vector<1x256xf32>
    %439 = arith.mulf %437, %438 : vector<1x256xf32>
    %440 = arith.addf %368, %439 : vector<1x256xf32>
    %c6 = arith.constant 6 : index
    %441 = memref.load %arg1[%c6] : memref<98xf32, #tpu.memory_space<smem>>
    %c0_159 = arith.constant 0 : index
    %c83 = arith.constant 83 : index
    %442 = vector.load %arg5[%c0_159, %c83] : memref<2x512xf32, #tpu.memory_space<vmem>>, vector<1x256xf32>
    %443 = vector.broadcast %441 : f32 to vector<1x256xf32>
    %444 = arith.mulf %443, %442 : vector<1x256xf32>
    %c13 = arith.constant 13 : index
    %445 = memref.load %arg1[%c13] : memref<98xf32, #tpu.memory_space<smem>>
    %c0_160 = arith.constant 0 : index
    %c99 = arith.constant 99 : index
    %446 = vector.load %arg5[%c0_160, %c99] : memref<2x512xf32, #tpu.memory_space<vmem>>, vector<1x256xf32>
    %447 = vector.broadcast %445 : f32 to vector<1x256xf32>
    %448 = arith.mulf %447, %446 : vector<1x256xf32>
    %449 = arith.addf %444, %448 : vector<1x256xf32>
    %c20 = arith.constant 20 : index
    %450 = memref.load %arg1[%c20] : memref<98xf32, #tpu.memory_space<smem>>
    %c0_161 = arith.constant 0 : index
    %c115 = arith.constant 115 : index
    %451 = vector.load %arg5[%c0_161, %c115] : memref<2x512xf32, #tpu.memory_space<vmem>>, vector<1x256xf32>
    %452 = vector.broadcast %450 : f32 to vector<1x256xf32>
    %453 = arith.mulf %452, %451 : vector<1x256xf32>
    %454 = arith.addf %449, %453 : vector<1x256xf32>
    %c27 = arith.constant 27 : index
    %455 = memref.load %arg1[%c27] : memref<98xf32, #tpu.memory_space<smem>>
    %c0_162 = arith.constant 0 : index
    %c131 = arith.constant 131 : index
    %456 = vector.load %arg5[%c0_162, %c131] : memref<2x512xf32, #tpu.memory_space<vmem>>, vector<1x256xf32>
    %457 = vector.broadcast %455 : f32 to vector<1x256xf32>
    %458 = arith.mulf %457, %456 : vector<1x256xf32>
    %459 = arith.addf %454, %458 : vector<1x256xf32>
    %c34 = arith.constant 34 : index
    %460 = memref.load %arg1[%c34] : memref<98xf32, #tpu.memory_space<smem>>
    %c0_163 = arith.constant 0 : index
    %c147 = arith.constant 147 : index
    %461 = vector.load %arg5[%c0_163, %c147] : memref<2x512xf32, #tpu.memory_space<vmem>>, vector<1x256xf32>
    %462 = vector.broadcast %460 : f32 to vector<1x256xf32>
    %463 = arith.mulf %462, %461 : vector<1x256xf32>
    %464 = arith.addf %459, %463 : vector<1x256xf32>
    %c41 = arith.constant 41 : index
    %465 = memref.load %arg1[%c41] : memref<98xf32, #tpu.memory_space<smem>>
    %c0_164 = arith.constant 0 : index
    %c163 = arith.constant 163 : index
    %466 = vector.load %arg5[%c0_164, %c163] : memref<2x512xf32, #tpu.memory_space<vmem>>, vector<1x256xf32>
    %467 = vector.broadcast %465 : f32 to vector<1x256xf32>
    %468 = arith.mulf %467, %466 : vector<1x256xf32>
    %469 = arith.addf %464, %468 : vector<1x256xf32>
    %c48 = arith.constant 48 : index
    %470 = memref.load %arg1[%c48] : memref<98xf32, #tpu.memory_space<smem>>
    %c0_165 = arith.constant 0 : index
    %c179 = arith.constant 179 : index
    %471 = vector.load %arg5[%c0_165, %c179] : memref<2x512xf32, #tpu.memory_space<vmem>>, vector<1x256xf32>
    %472 = vector.broadcast %470 : f32 to vector<1x256xf32>
    %473 = arith.mulf %472, %471 : vector<1x256xf32>
    %474 = arith.addf %469, %473 : vector<1x256xf32>
    %c55 = arith.constant 55 : index
    %475 = memref.load %arg1[%c55] : memref<98xf32, #tpu.memory_space<smem>>
    %c1_166 = arith.constant 1 : index
    %c83_167 = arith.constant 83 : index
    %476 = vector.load %arg5[%c1_166, %c83_167] : memref<2x512xf32, #tpu.memory_space<vmem>>, vector<1x256xf32>
    %477 = vector.broadcast %475 : f32 to vector<1x256xf32>
    %478 = arith.mulf %477, %476 : vector<1x256xf32>
    %479 = arith.addf %474, %478 : vector<1x256xf32>
    %c62 = arith.constant 62 : index
    %480 = memref.load %arg1[%c62] : memref<98xf32, #tpu.memory_space<smem>>
    %c1_168 = arith.constant 1 : index
    %c99_169 = arith.constant 99 : index
    %481 = vector.load %arg5[%c1_168, %c99_169] : memref<2x512xf32, #tpu.memory_space<vmem>>, vector<1x256xf32>
    %482 = vector.broadcast %480 : f32 to vector<1x256xf32>
    %483 = arith.mulf %482, %481 : vector<1x256xf32>
    %484 = arith.addf %479, %483 : vector<1x256xf32>
    %c69 = arith.constant 69 : index
    %485 = memref.load %arg1[%c69] : memref<98xf32, #tpu.memory_space<smem>>
    %c1_170 = arith.constant 1 : index
    %c115_171 = arith.constant 115 : index
    %486 = vector.load %arg5[%c1_170, %c115_171] : memref<2x512xf32, #tpu.memory_space<vmem>>, vector<1x256xf32>
    %487 = vector.broadcast %485 : f32 to vector<1x256xf32>
    %488 = arith.mulf %487, %486 : vector<1x256xf32>
    %489 = arith.addf %484, %488 : vector<1x256xf32>
    %c76 = arith.constant 76 : index
    %490 = memref.load %arg1[%c76] : memref<98xf32, #tpu.memory_space<smem>>
    %c1_172 = arith.constant 1 : index
    %c131_173 = arith.constant 131 : index
    %491 = vector.load %arg5[%c1_172, %c131_173] : memref<2x512xf32, #tpu.memory_space<vmem>>, vector<1x256xf32>
    %492 = vector.broadcast %490 : f32 to vector<1x256xf32>
    %493 = arith.mulf %492, %491 : vector<1x256xf32>
    %494 = arith.addf %489, %493 : vector<1x256xf32>
    %c83_174 = arith.constant 83 : index
    %495 = memref.load %arg1[%c83_174] : memref<98xf32, #tpu.memory_space<smem>>
    %c1_175 = arith.constant 1 : index
    %c147_176 = arith.constant 147 : index
    %496 = vector.load %arg5[%c1_175, %c147_176] : memref<2x512xf32, #tpu.memory_space<vmem>>, vector<1x256xf32>
    %497 = vector.broadcast %495 : f32 to vector<1x256xf32>
    %498 = arith.mulf %497, %496 : vector<1x256xf32>
    %499 = arith.addf %494, %498 : vector<1x256xf32>
    %c90 = arith.constant 90 : index
    %500 = memref.load %arg1[%c90] : memref<98xf32, #tpu.memory_space<smem>>
    %c1_177 = arith.constant 1 : index
    %c163_178 = arith.constant 163 : index
    %501 = vector.load %arg5[%c1_177, %c163_178] : memref<2x512xf32, #tpu.memory_space<vmem>>, vector<1x256xf32>
    %502 = vector.broadcast %500 : f32 to vector<1x256xf32>
    %503 = arith.mulf %502, %501 : vector<1x256xf32>
    %504 = arith.addf %499, %503 : vector<1x256xf32>
    %c97_179 = arith.constant 97 : index
    %505 = memref.load %arg1[%c97_179] : memref<98xf32, #tpu.memory_space<smem>>
    %c1_180 = arith.constant 1 : index
    %c179_181 = arith.constant 179 : index
    %506 = vector.load %arg5[%c1_180, %c179_181] : memref<2x512xf32, #tpu.memory_space<vmem>>, vector<1x256xf32>
    %507 = vector.broadcast %505 : f32 to vector<1x256xf32>
    %508 = arith.mulf %507, %506 : vector<1x256xf32>
    %509 = arith.addf %504, %508 : vector<1x256xf32>
    %c6_182 = arith.constant 6 : index
    %c0_183 = arith.constant 0 : index
    %510 = vector.load %arg2[%c6_182, %c0_183] : memref<7x256xf32, #tpu.memory_space<vmem>>, vector<1x256xf32>
    %511 = arith.mulf %509, %510 : vector<1x256xf32>
    %512 = arith.addf %440, %511 : vector<1x256xf32>
    %cst_184 = arith.constant 5.000000e-01 : f32
    %513 = vector.broadcast %cst_184 : f32 to vector<1x256xf32>
    %514 = arith.mulf %513, %512 : vector<1x256xf32>
    %515 = math.tanh %514 : vector<1x256xf32>
    %cst_185 = arith.constant 5.000000e-01 : f32
    %516 = vector.broadcast %cst_185 : f32 to vector<1x256xf32>
    %517 = arith.mulf %516, %515 : vector<1x256xf32>
    %cst_186 = arith.constant 5.000000e-01 : f32
    %518 = vector.broadcast %cst_186 : f32 to vector<1x256xf32>
    %519 = arith.addf %517, %518 : vector<1x256xf32>
    %c0_187 = arith.constant 0 : index
    %c0_188 = arith.constant 0 : index
    %c0_189 = arith.constant 0 : index
    %520 = vector.load %arg3[%c0_187, %c0_188, %c0_189] : memref<1x4x256xf32, #tpu.memory_space<vmem>>, vector<1x4x256xf32>
    %521 = vector.shape_cast %520 : vector<1x4x256xf32> to vector<4x256xf32>
    %522 = vector.broadcast %519 : vector<1x256xf32> to vector<4x256xf32>
    %523 = arith.mulf %521, %522 : vector<4x256xf32>
    %c0_190 = arith.constant 0 : index
    %c0_191 = arith.constant 0 : index
    %c0_192 = arith.constant 0 : index
    %524 = vector.load %arg4[%c0_190, %c0_191, %c0_192] : memref<1x4x256xf32, #tpu.memory_space<vmem>>, vector<1x4x256xf32>
    %525 = vector.shape_cast %524 : vector<1x4x256xf32> to vector<4x256xf32>
    %526 = vector.shape_cast %523 : vector<4x256xf32> to vector<1x4x256xf32>
    tpu.vector_store %arg4[%c0_190, %c0_191, %c0_192], %526 {strides = array<i32>} : memref<1x4x256xf32, #tpu.memory_space<vmem>>, vector<1x4x256xf32>,
    return
  }
  func.func @transform_0(%arg0: i32) -> i32 {
    %c0_i32 = arith.constant 0 : i32
    %c0_i32_0 = arith.constant 0 : i32
    return %c0_i32 : i32
  }
  func.func @transform_1(%arg0: i32) -> (i32, i32) {
    %c0_i32 = arith.constant 0 : i32
    %c0_i32_0 = arith.constant 0 : i32
    %c0_i32_1 = arith.constant 0 : i32
    return %c0_i32, %c0_i32_0 : i32, i32
  }
  func.func @transform_2(%arg0: i32) -> (i32, i32, i32) {
    %c0_i32 = arith.constant 0 : i32
    %c0_i32_0 = arith.constant 0 : i32
    %c0_i32_1 = arith.constant 0 : i32
    return %arg0, %c0_i32, %c0_i32_0 : i32, i32, i32
  }
  func.func @transform_3(%arg0: i32) -> (i32, i32, i32) {
    %c0_i32 = arith.constant 0 : i32
    %c0_i32_0 = arith.constant 0 : i32
    %c0_i32_1 = arith.constant 0 : i32
    return %arg0, %c0_i32, %c0_i32_0 : i32, i32, i32
  }
}

</mosaic_0001>

<bundles_post_ra>
// kernel: spatial_attention.1
= control target key start
LH: loop header
LB: loop body
LE: loop exit
PB: predicated region body
PF: predicated region fallthrough
CT: control target
= control target key end

     0   :  { %8 = vsyncpa [#allocation4], 0  ;;  %s1613_s12 = smov 0   ;;  %s2160_s0 = inlined_call_operand.vmem [shape: f32[98], index: 0, kind: input, shape index: {}]   ;;  %s2161_s1 = inlined_call_operand.vmem [shape: f32[7,256], index: 1, kind: input, shape index: {}]   ;;  %s2162_s2 = inlined_call_operand.vmem [shape: f32[2,4,256], index: 2, kind: input, shape index: {}]   ;;  %s2163_s3 = inlined_call_operand.vmem [shape: f32[2,4,256], index: 3, kind: output, shape index: {}]  }
   0x1 LB: > { %s1381_s13 = sadd.s32 4294967295, %s1569_s12   ;;  %p1383_p0 = scmp.ge.s32.totalorder %s1569_s12, 1  ;;  %s1569_s12 = sphi %s1613_s12, %s14_s12  }
   0x2   : > { %p113_p1 = scmp.lt.s32.totalorder %s1569_s12, 3  ;;  %s126_s16 = sshll.u32 %s2160_s0, 4  ;;  %s127_s16 = int_to_ptr.vmem [resolvable:$true] %s126_s16 }
   0x3   : > { %p1507_p3 = scmp.eq.s32.totalorder %s1381_s13, 0  ;;  %s1544_s18 = scalar_lea.vmem %s127_s16, 16 }
   0x4   : > { %p1624_p2 = pnand %p1383_p0, %p113_p1  ;;  %p1545_p6 = scmp.ne.s32.totalorder %s127_s16, %s1544_s18 }
   0x5   : > { %p1552_p10 = scmp.lt.s32.totalorder %s127_s16, %s127_s16  ;;  %p1553_p11 = scmp.lt.s32.totalorder %s1544_s18, %s1544_s18 }
   0x6   : > { %p1503_p4 = pneg %p1624_p2 }
   0x7   : > { %p1554_p12 = por %p1553_p11, %p1552_p10 }
   0x8   : > { %p1504_p5 = pnand %p1507_p3, %p1503_p4 }
   0xa   : > { %p1546_p7 = pneg %p1504_p5 }
   0xc   : > { %p1547_p8 = pnand %p1546_p7, %p1545_p6 }
   0xe   : > { %p1548_p9 = pneg %p1547_p8 }
  0x10   : > { %p1555_p13 = pnand %p1554_p12, %p1548_p9 }
  0x12   : > { %1558 = shalt.err (!%p1555_p13)
}
  0x13   : > { %s1571_s19 = smov [#allocation3]   ;;  %150 = sbr.rel (%p1624_p2) target bundleno = 604 (0x25c), region = 32 }
  0x14   : > { %1506 = dma.vmem_to_smem (!%p1504_p5), %s127_s16, 16, %s1571_s19, [#allocation4]  }
  0x18   : > { %1564 = dma.done.wait (%p1507_p3), [#allocation4], 16  }
  0x19   : > { %1566 = vsyncadd (%p1507_p3), [#allocation4], 4294967280 }
  0x1a   : > { %156 = sfence }
  0x1b   : > { %p175_p0 = scmp.lt.s32.totalorder %s1381_s13, 1  ;;  %v1572_v0 = vmov 0.0   ;;  %vm190_vm0 = vcmask 1043456   ;;  %v225_v12 = vlaneseq  ;;  %v1573_v16 = vmov 1966171168   ;;  %s1421_s24 = sld [smem:[#allocation3 + $0x9]] }
  0x1c   : > { %185 = vst [vmem:[#allocation2] sm:$0xff] %v1572_v0  ;;  %v223_v17 = vunpack.c.l.s4 %v1573_v16  ;;  %s1406_s25 = sld [smem:[#allocation3 + $0x8]]  ;;  %s1574_s5 = smov 112   ;;  %vm274_vm2 = vcmask 916480   ;;  %vm285_vm3 = vcmask 785408   ;;  %vm296_vm4 = vcmask 654336  }
  0x1d   : > { %s2166_s13 = smov (!%p175_p0, %s1381_s13), 1  ;;  %v1650_v23 = vshrl.u32 %v225_v12, 7  ;;  %vm239_vm1 = vcmp.lt.s32.totalorder %v225_v12, 256  ;;  %s1408_s26 = sld [smem:[#allocation3 + $0x16]]  ;;  %vm309_vm5 = vcmask 523264   ;;  %vm320_vm6 = vcmask 392192  }
  0x1e   : > { %s1497_s20 = sshll.u32 %s2166_s13, 3  ;;  %v224_v27 = vunpack.c.0.s8 %v223_v17  ;;  %s1407_s27 = sld [smem:[#allocation3 + $0xf]]  ;;  %vm331_vm7 = vcmask 261120   ;;  %vm545_vm8 = vcmask 637952   ;;  %vm690_vm9 = vcmask 646144  }
  0x1f   : > { %s1643_s23 = scalar_lea.vmem %s2162_s2, %s1497_s20  ;;  %s1436_s28 = sld [smem:[#allocation3 + $0xa]]  ;;  %vm981_vm10 = vcmask 662528   ;;  %vm1126_vm11 = vcmask 670720   ;;  %vm1271_vm12 = vcmask 678912   ;;  %vm408_vm13 = vcmask 629760  }
  0x20   : > { %v186_v1 = vld [vmem:[%s1643_s23] sm:$0xff]  ;;  %v227_v35 = vsub.s32 %v224_v27, %v1650_v23  ;;  %s1422_s29 = sld [smem:[#allocation3 + $0x10]]  ;;  %s1575_s8 = smov 80   ;;  %vm553_vm14 = vcmask 1039360   ;;  %vm698_vm15 = vcmask 1031168  }
  0x21   : > { %v188_v2 = vcombine.high %v186_v1, %v186_v1  ;;  %v191_v3 = vsel %vm190_vm0, %v186_v1, 0.0  ;;  %v205_v4 = vsel %vm190_vm0, %v186_v1, -inf  ;;  %v561_v43 = vstv %s1421_s24  ;;  %s1423_s30 = sld [smem:[#allocation3 + $0x17]]  ;;  %s1576_s9 = smov 96  }
  0x22   : > { %v192_v5 = vrot.slane %v191_v3, 4  ;;  %v206_v6 = vrot.slane %v205_v4, 4  ;;  %v416_v44 = vstv %s1406_s25  ;;  %s1409_s4 = sld [smem:[#allocation3 + $0x1d]]  ;;  %s1577_s16 = smov 64  }
  0x23   : > { %v198_v7 = vsel %vm190_vm0, %v188_v2, 0.0  ;;  %v212_v8 = vsel %vm190_vm0, %v188_v2, -inf  ;;  %v436_v46 = vstv %s1408_s26  ;;  %s1451_s6 = sld [smem:[#allocation3 + $0xb]]  ;;  %s1578_s22 = smov 48  }
  0x24   : > { %v193_v9 = vadd.f32 %v192_v5, %v191_v3  ;;  %v199_v10 = vrot.slane %v198_v7, 4  ;;  %v207_v11 = vmax.f32 %v205_v4, %v206_v6  ;;  %v213_v13 = vrot.slane %v212_v8, 4  ;;  %s1437_s7 = sld [smem:[#allocation3 + $0x11]] }
  0x25   : > { %v426_v47 = vstv %s1407_s27  ;;  %v706_v52 = vstv %s1436_s28  ;;  %s1424_s10 = sld [smem:[#allocation3 + $0x1e]]  ;;  %s1579_s28 = smov 32  }
  0x26   : > { %v194_v14 = vrot.slane %v193_v9, 2  ;;  %v200_v15 = vadd.f32 %v199_v10, %v198_v7  ;;  %v208_v18 = vrot.slane %v207_v11, 2  ;;  %v214_v19 = vmax.f32 %v212_v8, %v213_v13  ;;  %s1410_s11 = sld [smem:[#allocation3 + $0x24]] }
  0x27   : > { %v571_v53 = vstv %s1422_s29  ;;  %v581_v56 = vstv %s1423_s30  ;;  %s1452_s14 = sld [smem:[#allocation3 + $0x12]] }
  0x28   : > { %v195_v20 = vadd.f32 %v194_v14, %v193_v9  ;;  %v201_v21 = vrot.slane %v200_v15, 2  ;;  %v209_v22 = vmax.f32 %v207_v11, %v208_v18  ;;  %v215_v24 = vrot.slane %v214_v19, 2  ;;  %s1438_s15 = sld [smem:[#allocation3 + $0x18]] }
  0x29   : > { %v446_v58 = vstv %s1409_s4  ;;  %v852_v61 = vstv %s1451_s6  ;;  %s1411_s17 = sld [smem:[#allocation3 + $0x2b]] }
  0x2a   : > { %v196_v25 = vrot.slane %v195_v20, 1  ;;  %v202_v26 = vadd.f32 %v201_v21, %v200_v15  ;;  %v210_v28 = vrot.slane %v209_v22, 1  ;;  %v216_v29 = vmax.f32 %v214_v19, %v215_v24  ;;  %s1466_s18 = sld [smem:[#allocation3 + $0xc]] }
  0x2b   : > { %v716_v62 = vstv %s1437_s7  ;;  %v591_v1 = vstv %s1424_s10  ;;  %s1439_s19 = sld [smem:[#allocation3 + $0x1f]] }
  0x2c   : > { %v197_v30 = vadd.f32 %v196_v25, %v195_v20  ;;  %v203_v31 = vrot.slane %v202_v26, 1  ;;  %v211_v32 = vmax.f32 %v209_v22, %v210_v28  ;;  %v217_v33 = vrot.slane %v216_v29, 1  ;;  %s1425_s21 = sld [smem:[#allocation3 + $0x25]] }
  0x2d   : > { %v456_v2 = vstv %s1410_s11  ;;  %v862_v5 = vstv %s1452_s14  ;;  %s1467_s24 = sld [smem:[#allocation3 + $0x13]] }
  0x2e   : > { %v204_v34 = vadd.f32 %v203_v31, %v202_v26  ;;  %v218_v36 = vmax.f32 %v216_v29, %v217_v33  ;;  %v727_v7 = vstv %s1438_s15  ;;  %s1453_s25 = sld [smem:[#allocation3 + $0x19]] }
  0x2f   : > { %v466_v10 = vstv %s1411_s17  ;;  %s1426_s26 = sld [smem:[#allocation3 + $0x2c]] }
  0x30   : > { %v221_v37 = vcombine.low %v197_v30, %v204_v34  ;;  %v245_v38 = vcombine.low %v211_v32, %v218_v36  ;;  %v997_v11 = vstv %s1466_s18  ;;  %s1481_s27 = sld [smem:[#allocation3 + $0xd]] }
  0x31   : > { %v737_v14 = vstv %s1439_s19  ;;  %s1454_s29 = sld [smem:[#allocation3 + $0x20]] }
  0x32   : > { %v228_v39 = vrot.slane %v221_v37, %v227_v35  ;;  %v252_v40 = vrot.slane %v245_v38, %v227_v35  ;;  %v601_v15 = vstv %s1425_s21  ;;  %s1440_s30 = sld [smem:[#allocation3 + $0x26]] }
  0x33   : > { %v1007_v18 = vstv %s1467_s24  ;;  %s1482_s4 = sld [smem:[#allocation3 + $0x14]] }
  0x34   : > { %v235_v41 = vrot.slane %v228_v39, %v227_v35  ;;  %v259_v42 = vrot.slane %v252_v40, %v227_v35  ;;  %v872_v19 = vstv %s1453_s25  ;;  %s1468_s6 = sld [smem:[#allocation3 + $0x1a]] }
  0x35   : > { %v611_v22 = vstv %s1426_s26  ;;  %s1441_s7 = sld [smem:[#allocation3 + $0x2d]] }
  0x36   : > { %242 = vst.msk [vmem:[#allocation2 + $0x2] ss:$2 sm:$0x3] %vm239_vm1, %v235_v41  ;;  %262 = vst.msk [vmem:[#allocation2 + $0x3] ss:$2 sm:$0x3] %vm239_vm1, %v259_v42  ;;  %v1142_v24 = vstv %s1481_s27 }
  0x37   : > { %v882_v27 = vstv %s1454_s29  ;;  %s1413_s10 = sld [smem:[#allocation3 + $0x39]]  ;;  %vm844_vm1 = vcmask 1022976  }
  0x38   : > { %v747_v28 = vstv %s1440_s30  ;;  %s1469_s11 = sld [smem:[#allocation3 + $0x21]] }
  0x39   : > { %v1152_v31 = vstv %s1482_s4  ;;  %s1455_s14 = sld [smem:[#allocation3 + $0x27]] }
  0x3a   : > { %v1017_v32 = vstv %s1468_s6  ;;  %s1414_s15 = sld [smem:[#allocation3 + $0x40]] }
  0x3b   : > { %v757_v35 = vstv %s1441_s7  ;;  %s1483_s17 = sld [smem:[#allocation3 + $0x1b]] }
  0x3c   : > { %s1456_s18 = sld [smem:[#allocation3 + $0x2e]] }
  0x3d   : > { %v1653_v45 = vld [vmem:[#allocation2] ss:$2 sm:$0x7]  ;;  %v1706_v36 = vld [vmem:[#allocation2 + $0x1] ss:$2 sm:$0x7]  ;;  %v480_v37 = vstv %s1413_s10 }
  0x3e   : > { %v562_v48 = vmul.f32 %v561_v43, %v1653_v45  ;;  %v417_v49 = vmul.f32 %v416_v44, %v1653_v45  ;;  %v437_v50 = vmul.f32 %v436_v46, %v1653_v45  ;;  %v427_v51 = vmul.f32 %v426_v47, %v1653_v45  ;;  %v1665_v57 = vld [vmem:[#allocation2 + $0x2] ss:$2 sm:$0x7]  ;;  %s1428_s19 = sld [smem:[#allocation3 + $0x3a]] }
  0x3f   : > { %v707_v54 = vmul.f32 %v706_v52, %v1653_v45  ;;  %v572_v55 = vmul.f32 %v571_v53, %v1653_v45  ;;  %v582_v59 = vmul.f32 %v581_v56, %v1653_v45  ;;  %v447_v60 = vmul.f32 %v446_v58, %v1665_v57  ;;  %v726_v6 = vld [vmem:[#allocation2 + $0x2] ss:$2 sm:$0x3]  ;;  %s1484_s21 = sld [smem:[#allocation3 + $0x22]] }
  0x40   : > { %564 = vrot.lane.b32.xlu1 %v562_v48, %s1574_s5  ;;  %419 = vrot.lane.b32.xlu0 %v417_v49, %s1574_s5  ;;  %v853_v63 = vmul.f32 %v852_v61, %v1653_v45  ;;  %v717_v0 = vmul.f32 %v716_v62, %v1653_v45  ;;  %v592_v3 = vmul.f32 %v591_v1, %v1665_v57  ;;  %v1027_v40 = vstv %s1469_s11  ;;  %s1470_s24 = sld [smem:[#allocation3 + $0x28]] }
  0x41   : > { %v457_v4 = vmul.f32 %v456_v2, %v1665_v57  ;;  %v863_v8 = vmul.f32 %v862_v5, %v1653_v45  ;;  %v728_v9 = vmul.f32 %v727_v7, %v726_v6  ;;  %v467_v12 = vmul.f32 %v466_v10, %v1665_v57  ;;  %s1429_s25 = sld [smem:[#allocation3 + $0x41]]  ;;  %v1736_v2 = vld [vmem:[#allocation2 + $0x3] ss:$2 sm:$0x7] }
  0x42   : > { %v998_v13 = vmul.f32 %v997_v11, %v1653_v45  ;;  %v738_v16 = vmul.f32 %v737_v14, %v1665_v57  ;;  %v602_v17 = vmul.f32 %v601_v15, %v1665_v57  ;;  %v1008_v20 = vmul.f32 %v1007_v18, %v1653_v45  ;;  %s1415_s26 = sld [smem:[#allocation3 + $0x47]] }
  0x43   : > { %v873_v21 = vmul.f32 %v872_v19, %v1665_v57  ;;  %v612_v25 = vmul.f32 %v611_v22, %v1665_v57  ;;  %v1143_v26 = vmul.f32 %v1142_v24, %v1653_v45  ;;  %v883_v29 = vmul.f32 %v882_v27, %v1665_v57  ;;  %s1471_s27 = sld [smem:[#allocation3 + $0x2f]] }
  0x44   : > { %439 = vrot.lane.b32.xlu1 %v437_v50, %s1575_s8  ;;  %429 = vrot.lane.b32.xlu0 %v427_v51, %s1576_s9  ;;  %v748_v30 = vmul.f32 %v747_v28, %v1665_v57  ;;  %v1153_v33 = vmul.f32 %v1152_v31, %v1653_v45  ;;  %v1018_v34 = vmul.f32 %v1017_v32, %v1665_v57  ;;  %v892_v41 = vstv %s1455_s14  ;;  %s1443_s29 = sld [smem:[#allocation3 + $0x3b]] }
  0x45   : > { %v758_v38 = vmul.f32 %v757_v35, %v1665_v57  ;;  %v481_v39 = vmul.f32 %v480_v37, %v1706_v36  ;;  %v1028_v42 = vmul.f32 %v1027_v40, %v1665_v57  ;;  %v893_v43 = vmul.f32 %v892_v41, %v1665_v57  ;;  %s1416_s30 = sld [smem:[#allocation3 + $0x4e]]  ;;  %v1419_v40 = vld [vmem:[%s2161_s1 + $0x1] ss:$8 sm:$0x3] }
  0x46   : > { %v490_v44 = vstv %s1414_s15  ;;  %v1162_v46 = vstv %s1483_s17  ;;  %v902_v49 = vstv %s1456_s18  ;;  %v625_v50 = vstv %s1428_s19  ;;  %s1485_s4 = sld [smem:[#allocation3 + $0x29]] }
  0x47   : > { %v491_v47 = vmul.f32 %v490_v44, %v1706_v36  ;;  %v1163_v48 = vmul.f32 %v1162_v46, %v1665_v57  ;;  %v903_v51 = vmul.f32 %v902_v49, %v1665_v57  ;;  %v626_v52 = vmul.f32 %v625_v50, %v1706_v36  ;;  %s1444_s6 = sld [smem:[#allocation3 + $0x42]] }
  0x48   : > { %709 = vrot.lane.b32.xlu1 %v707_v54, %s1574_s5  ;;  %574 = vrot.lane.b32.xlu0 %v572_v55, %s1576_s9  ;;  %v1172_v53 = vstv %s1484_s21  ;;  %v1037_v54 = vstv %s1470_s24  ;;  %s1430_s7 = sld [smem:[#allocation3 + $0x48]] }
  0x49   : > { %v1173_v55 = vmul.f32 %v1172_v53, %v1665_v57  ;;  %v1038_v56 = vmul.f32 %v1037_v54, %v1665_v57  ;;  %v635_v58 = vstv %s1429_s25  ;;  %v1047_v62 = vstv %s1471_s27  ;;  %s1486_s10 = sld [smem:[#allocation3 + $0x30]] }
  0x4a   : > { %s1458_s11 = sld [smem:[#allocation3 + $0x3c]] }
  0x4b   : > { %s1431_s14 = sld [smem:[#allocation3 + $0x4f]] }
  0x4c   : > { %584 = vrot.lane.b32.xlu1 %v582_v59, %s1575_s8  ;;  %449 = vrot.lane.b32.xlu0 %v447_v60, %s1577_s16  ;;  %v500_v59 = vstv %s1415_s26  ;;  %v636_v60 = vmul.f32 %v635_v58, %v1706_v36  ;;  %s1417_s15 = sld [smem:[#allocation3 + $0x55]] }
  0x4d   : > { %v501_v61 = vmul.f32 %v500_v59, %v1706_v36  ;;  %v781_v7 = vstv %s1444_s6  ;;  %s1459_s17 = sld [smem:[#allocation3 + $0x43]] }
  0x4e   : > { %s1445_s18 = sld [smem:[#allocation3 + $0x49]] }
  0x4f   : > { %v1192_v11 = vstv %s1486_s10  ;;  %s1418_s19 = sld [smem:[#allocation3 + $0x5c]] }
  0x50   : > { %855 = vrot.lane.b32.xlu1 %v853_v63, %s1574_s5  ;;  %719 = vrot.lane.b32.xlu0 %v717_v0, %s1576_s9  ;;  %v771_v63 = vstv %s1443_s29  ;;  %v1048_v0 = vmul.f32 %v1047_v62, %v1665_v57  ;;  %s1473_s21 = sld [smem:[#allocation3 + $0x3d]] }
  0x51   : > { %v772_v1 = vmul.f32 %v771_v63, %v1706_v36  ;;  %v655_v15 = vstv %s1431_s14  ;;  %s1446_s24 = sld [smem:[#allocation3 + $0x50]]  ;;  %s1590_s14 = smov 123  }
  0x52   : > { %s1432_s25 = sld [smem:[#allocation3 + $0x56]] }
  0x53   : > { %v926_v19 = vstv %s1459_s17  ;;  %s1474_s26 = sld [smem:[#allocation3 + $0x44]] }
  0x54   : > { %594 = vrot.lane.b32.xlu1 %v592_v3, %s1577_s16  ;;  %459 = vrot.lane.b32.xlu0 %v457_v4, %s1578_s22  ;;  %v510_v3 = vstv %s1416_s30  ;;  %v1182_v4 = vstv %s1485_s4  ;;  %v927_v22 = vmul.f32 %v926_v19, %v1706_v36  ;;  %s1460_s27 = sld [smem:[#allocation3 + $0x4a]] }
  0x55   : > { %v511_v5 = vmul.f32 %v510_v3, %v1736_v2  ;;  %v1183_v6 = vmul.f32 %v1182_v4, %v1665_v57  ;;  %s1488_s29 = sld [smem:[#allocation3 + $0x3e]] }
  0x56   : > { %s1447_s30 = sld [smem:[#allocation3 + $0x57]] }
  0x57   : > { %s1433_s4 = sld [smem:[#allocation3 + $0x5d]] }
  0x58   : > { %865 = vrot.lane.b32.xlu1 %v863_v8, %s1576_s9  ;;  %730 = vrot.lane.b32.xlu0 %v728_v9, %s1575_s8  ;;  %v645_v8 = vstv %s1430_s7  ;;  %v782_v9 = vmul.f32 %v781_v7, %v1706_v36  ;;  %s1765_s6 = sld [smem:[#allocation3 + $0x1]]  ;;  %v1434_v7 = vld [vmem:[%s2161_s1 + $0x2] ss:$8 sm:$0x3] }
  0x59   : > { %v646_v10 = vmul.f32 %v645_v8, %v1706_v36  ;;  %s1475_s7 = sld [smem:[#allocation3 + $0x4b]] }
  0x5a   : > { %s1461_s10 = sld [smem:[#allocation3 + $0x51]] }
  0x5b   : > { %s1779_s17 = sld [smem:[#allocation3 + $0x45]] }
  0x5c   : > { %469 = vrot.lane.b32.xlu1 %v467_v12, %s1579_s28  ;;  %1000 = vrot.lane.b32.xlu0 %v998_v13, %s1574_s5  ;;  %v916_v12 = vstv %s1458_s11  ;;  %v1193_v13 = vmul.f32 %v1192_v11, %v1665_v57  ;;  %s1774_s11 = sld [smem:[#allocation3 + $0x2]]  ;;  %v812_v41 = vstv %s1447_s30 }
  0x5d   : > { %v917_v14 = vmul.f32 %v916_v12, %v1706_v36  ;;  %s1814_s30 = sld [smem:[#allocation3 + $0x5f]] }
  0x5e   : > { %v413_v46 = vstv %s1765_s6  ;;  %s1581_s6 = smov 79  }
  0x60   : > { %740 = vrot.lane.b32.xlu1 %v738_v16, %s1577_s16  ;;  %604 = vrot.lane.b32.xlu0 %v602_v17, %s1578_s22  ;;  %v520_v16 = vstv %s1417_s15  ;;  %v656_v17 = vmul.f32 %v655_v15, %v1736_v2  ;;  %s1591_s15 = smov 122  }
  0x61   : > { %v521_v18 = vmul.f32 %v520_v16, %v1736_v2  ;;  %v1216_v59 = vstv %s1779_s17  ;;  %s1851_s17 = sld [smem:[#allocation3 + $0x5a]] }
  0x62   : > { %v1217_v3 = vmul.f32 %v1216_v59, %v1706_v36 }
  0x64   : > { %1010 = vrot.lane.b32.xlu1 %v1008_v20, %s1576_s9  ;;  %875 = vrot.lane.b32.xlu0 %v873_v21, %s1575_s8  ;;  %v791_v20 = vld [vmem:[#allocation2 + $0x3] ss:$2 sm:$0x3]  ;;  %v792_v21 = vstv %s1445_s18  ;;  %s1580_s18 = smov 78  }
  0x65   : > { %v793_v24 = vmul.f32 %v792_v21, %v791_v20 }
  0x68   : > { %614 = vrot.lane.b32.xlu1 %v612_v25, %s1579_s28  ;;  %1145 = vrot.lane.b32.xlu0 %v1143_v26, %s1574_s5  ;;  %v530_v25 = vstv %s1418_s19  ;;  %v1061_v26 = vstv %s1473_s21  ;;  %s1784_s19 = sld [smem:[#allocation3 + $0x58]] }
  0x69   : > { %v531_v27 = vmul.f32 %v530_v25, %v1736_v2  ;;  %v1062_v28 = vmul.f32 %v1061_v26, %v1706_v36  ;;  %s1787_s21 = sld [smem:[#allocation3 + $0x5e]] }
  0x6c   : > { %885 = vrot.lane.b32.xlu1 %v883_v29, %s1577_s16  ;;  %750 = vrot.lane.b32.xlu0 %v748_v30, %s1578_s22  ;;  %v802_v29 = vstv %s1446_s24  ;;  %v665_v30 = vstv %s1432_s25  ;;  %s1789_s24 = sld [smem:[#allocation3 + $0x3]] }
  0x6d   : > { %v803_v31 = vmul.f32 %v802_v29, %v1736_v2  ;;  %v666_v32 = vmul.f32 %v665_v30, %v1736_v2  ;;  %s1796_s25 = sld [smem:[#allocation3 + $0x4c]] }
  0x6e   : > { %v956_v4 = vstv %s1784_s19  ;;  %s1864_s19 = sld [smem:[#allocation3 + $0x61]] }
  0x6f   : > { %v822_v8 = vstv %s1787_s21  ;;  %s1869_s21 = sld [smem:[#allocation3 + $0x7]] }
  0x70   : > { %1155 = vrot.lane.b32.xlu1 %v1153_v33, %s1576_s9  ;;  %1020 = vrot.lane.b32.xlu0 %v1018_v34, %s1575_s8  ;;  %v1071_v33 = vstv %s1474_s26  ;;  %v936_v34 = vstv %s1460_s27  ;;  %s1801_s26 = sld [smem:[#allocation3 + $0x52]]  ;;  %s1582_s27 = smov 81  }
  0x71   : > { %v1072_v35 = vmul.f32 %v1071_v33, %v1706_v36  ;;  %v937_v37 = vmul.f32 %v936_v34, %v1736_v2 }
  0x72   : > { %v703_v16 = vstv %s1789_s24  ;;  %s1926_s24 = sld [smem:[#allocation3 + $0x46]] }
  0x73   : > { %v1226_v21 = vstv %s1796_s25  ;;  %v704_v29 = vmul.f32 %v703_v16, %v1653_v45  ;;  %s1931_s25 = sld [smem:[#allocation3 + $0x4d]] }
  0x74   : > { %760 = vrot.lane.b32.xlu1 %v758_v38, %s1579_s28  ;;  %483 = vrot.lane.b32.xlu0 %v481_v39, %s1574_s5  ;;  %v1206_v38 = vstv %s1488_s29  ;;  %v1227_v30 = vmul.f32 %v1226_v21, %v1736_v2  ;;  %s2038_s29 = sld [smem:[#allocation3 + $0x35]] }
  0x75   : > { %v1207_v39 = vmul.f32 %v1206_v38, %v1706_v36 }
  0x78   : > { %1030 = vrot.lane.b32.xlu1 %v1028_v42, %s1577_s16  ;;  %895 = vrot.lane.b32.xlu0 %v893_v43, %s1578_s22  ;;  %v675_v42 = vstv %s1433_s4  ;;  %v813_v43 = vmul.f32 %v812_v41, %v1736_v2  ;;  %s1818_s4 = sld [smem:[#allocation3 + $0x4]] }
  0x79   : > { %v676_v44 = vmul.f32 %v675_v42, %v1736_v2 }
  0x7c   : > { %493 = vrot.lane.b32.xlu1 %v491_v47, %s1576_s9  ;;  %1165 = vrot.lane.b32.xlu0 %v1163_v48, %s1575_s8  ;;  %v1081_v47 = vstv %s1475_s7  ;;  %v946_v48 = vstv %s1461_s10  ;;  %s1823_s7 = sld [smem:[#allocation3 + $0x53]] }
  0x7d   : > { %v1082_v53 = vmul.f32 %v1081_v47, %v1736_v2  ;;  %v947_v54 = vmul.f32 %v946_v48, %v1736_v2  ;;  %s1828_s10 = sld [smem:[#allocation3 + $0x59]]  ;;  %v1449_v48 = vld [vmem:[%s2161_s1 + $0x3] ss:$8 sm:$0x3] }
  0x80   : > { %905 = vrot.lane.b32.xlu1 %v903_v51, %s1579_s28  ;;  %628 = vrot.lane.b32.xlu0 %v626_v52, %s1574_s5  ;;  %v414_v52 = vmul.f32 %v413_v46, %v1653_v45 }
  0x84   : > { %1175 = vrot.lane.b32.xlu1 %v1173_v55, %s1577_s16  ;;  %1040 = vrot.lane.b32.xlu0 %v1038_v56, %s1578_s22  ;;  %v558_v55 = vstv %s1774_s11  ;;  %s1839_s11 = sld [smem:[#allocation3 + $0x60]] }
  0x88   : > { %638 = vrot.lane.b32.xlu1 %v636_v60, %s1576_s9  ;;  %503 = vrot.lane.b32.xlu0 %v501_v61, %s1575_s8 }
  0x8c   : > { %1050 = vrot.lane.b32.xlu1 %v1048_v0, %s1579_s28  ;;  %774 = vrot.lane.b32.xlu0 %v772_v1, %s1574_s5  ;;  %v559_v0 = vmul.f32 %v558_v55, %v1653_v45 }
  0x90   : > { %513 = vrot.lane.b32.xlu1 %v511_v5, %s1577_s16  ;;  %1185 = vrot.lane.b32.xlu0 %v1183_v6, %s1578_s22 }
  0x94   : > { %784 = vrot.lane.b32.xlu1 %v782_v9, %s1576_s9  ;;  %648 = vrot.lane.b32.xlu0 %v646_v10, %s1575_s8 }
  0x98   : > { %1195 = vrot.lane.b32.xlu1 %v1193_v13, %s1579_s28  ;;  %919 = vrot.lane.b32.xlu0 %v917_v14, %s1574_s5  ;;  %v957_v14 = vmul.f32 %v956_v4, %v1736_v2 }
  0x9c   : > { %658 = vrot.lane.b32.xlu1 %v656_v17, %s1577_s16  ;;  %523 = vrot.lane.b32.xlu0 %v521_v18, %s1578_s22  ;;  %v823_v18 = vmul.f32 %v822_v8, %v1736_v2 }
  0xa0   : > { %929 = vrot.lane.b32.xlu1 %v927_v22, %s1576_s9  ;;  %795 = vrot.lane.b32.xlu0 %v793_v24, %s1575_s8  ;;  %v1091_v22 = vstv %s1801_s26  ;;  %s1877_s26 = sld [smem:[#allocation3 + $0xe]] }
  0xa4   : > { %533 = vrot.lane.b32.xlu1 %v531_v27, %s1579_s28  ;;  %1064 = vrot.lane.b32.xlu0 %v1062_v28, %s1574_s5 }
  0xa8   : > { %805 = vrot.lane.b32.xlu1 %v803_v31, %s1577_s16  ;;  %668 = vrot.lane.b32.xlu0 %v666_v32, %s1578_s22  ;;  %v1092_v31 = vmul.f32 %v1091_v22, %v1736_v2 }
  0xac   : > { %1074 = vrot.lane.b32.xlu1 %v1072_v35, %s1576_s9  ;;  %939 = vrot.lane.b32.xlu0 %v937_v37, %s1575_s8  ;;  %v966_v35 = vstv %s1814_s30  ;;  %s2040_s30 = sld [smem:[#allocation3 + $0x36]] }
  0xb0   : > { %542 = vrot.lane.b32.xlu1 %v1419_v40, %s1580_s18  ;;  %1209 = vrot.lane.b32.xlu0 %v1207_v39, %s1574_s5  ;;  %s1858_s18 = sld [smem:[#allocation3 + $0x5]] }
  0xb2   : > { %v565_v49 = vpop.permute.xlu1 %564  ;;  %v420_v50 = vpop.permute.xlu0 %419 }
  0xb3   : > { %v421_v51 = vrot.slane %v420_v50, 1  ;;  %v566_v56 = vrot.slane %v565_v49, 1 }
  0xb4   : > { %815 = vrot.lane.b32.xlu1 %v813_v43, %s1578_s22  ;;  %678 = vrot.lane.b32.xlu0 %v676_v44, %s1579_s28  ;;  %v849_v43 = vstv %s1818_s4  ;;  %v967_v44 = vmul.f32 %v966_v35, %v1736_v2  ;;  %s1884_s4 = sld [smem:[#allocation3 + $0x15]] }
  0xb5   : > { %v422_v58 = vsel %vm274_vm2, %v420_v50, %v421_v51  ;;  %v567_v5 = vsel %vm274_vm2, %v565_v49, %v566_v56  ;;  %v1236_v49 = vstv %s1823_s7  ;;  %v1101_v50 = vstv %s1828_s10  ;;  %s1893_s7 = sld [smem:[#allocation3 + $0x6]]  ;;  %s1583_s10 = smov 82  }
  0xb6   : > { %v440_v60 = vpop.permute.xlu1 %439  ;;  %v430_v61 = vpop.permute.xlu0 %429  ;;  %v424_v1 = vadd.f32 %v422_v58, %v414_v52  ;;  %v569_v15 = vadd.f32 %v567_v5, %v559_v0  ;;  %v850_v56 = vmul.f32 %v849_v43, %v1653_v45  ;;  %v1237_v58 = vmul.f32 %v1236_v49, %v1736_v2 }
  0xb7   : > { %v441_v62 = vrot.slane %v440_v60, 1  ;;  %v431_v63 = vrot.slane %v430_v61, 1  ;;  %v1102_v59 = vmul.f32 %v1101_v50, %v1736_v2  ;;  %v994_v21 = vstv %s1858_s18  ;;  %s1584_s18 = smov 83  }
  0xb8   : > { %1084 = vrot.lane.b32.xlu1 %v1082_v53, %s1575_s8  ;;  %949 = vrot.lane.b32.xlu0 %v947_v54, %s1577_s16 }
  0xb9   : > { %v432_v6 = vsel %vm285_vm3, %v430_v61, %v431_v63  ;;  %v442_v12 = vsel %vm296_vm4, %v440_v60, %v441_v62  ;;  %v1111_v63 = vstv %s1839_s11  ;;  %s1899_s11 = sld [smem:[#allocation3 + $0x23]] }
  0xba   : > { %v434_v9 = vadd.f32 %v432_v6, %v424_v1  ;;  %v710_v10 = vpop.permute.xlu1 %709  ;;  %v575_v11 = vpop.permute.xlu0 %574  ;;  %v1112_v8 = vmul.f32 %v1111_v63, %v1736_v2 }
  0xbb   : > { %v576_v13 = vrot.slane %v575_v11, 1  ;;  %v711_v19 = vrot.slane %v710_v10, 1 }
  0xbc   : > { %687 = vrot.lane.b32.xlu1 %v1434_v7, %s1581_s6  ;;  %1219 = vrot.lane.b32.xlu0 %v1217_v3, %s1576_s9  ;;  %v444_v17 = vadd.f32 %v442_v12, %v434_v9  ;;  %v1246_v12 = vstv %s1851_s17  ;;  %s1889_s6 = sld [smem:[#allocation3 + $0x1c]] }
  0xbd   : > { %v577_v20 = vsel %vm285_vm3, %v575_v11, %v576_v13  ;;  %v712_v32 = vsel %vm274_vm2, %v710_v10, %v711_v19  ;;  %v1464_v11 = vld [vmem:[%s2161_s1 + $0x4] ss:$8 sm:$0x3]  ;;  %v1247_v19 = vmul.f32 %v1246_v12, %v1736_v2  ;;  %s1908_s17 = sld [smem:[#allocation3 + $0x2a]] }
  0xbe   : > { %v579_v24 = vadd.f32 %v577_v20, %v569_v15  ;;  %v585_v25 = vpop.permute.xlu1 %584  ;;  %v450_v26 = vpop.permute.xlu0 %449  ;;  %v714_v42 = vadd.f32 %v712_v32, %v704_v29  ;;  %v268_v32 = vstv %s1869_s21  ;;  %s1919_s21 = sld [smem:[#allocation3 + $0x3f]] }
  0xbf   : > { %v586_v27 = vrot.slane %v585_v25, 1  ;;  %v451_v28 = vrot.slane %v450_v26, 7 }
  0xc0   : > { %959 = vrot.lane.b32.xlu1 %v957_v14, %s1578_s22  ;;  %825 = vrot.lane.b32.xlu0 %v823_v18, %s1579_s28  ;;  %v1479_v18 = vld [vmem:[%s2161_s1 + $0x5] ss:$8 sm:$0x3] }
  0xc1   : > { %v587_v33 = vsel %vm296_vm4, %v585_v25, %v586_v27  ;;  %v452_v34 = vsel %vm309_vm5, %v451_v28, %v450_v26 }
  0xc2   : > { %v589_v37 = vadd.f32 %v587_v33, %v579_v24  ;;  %v454_v38 = vadd.f32 %v452_v34, %v444_v17  ;;  %v856_v39 = vpop.permute.xlu1 %855  ;;  %v720_v40 = vpop.permute.xlu0 %719  ;;  %v1256_v24 = vstv %s1864_s19  ;;  %s1913_s19 = sld [smem:[#allocation3 + $0x38]] }
  0xc3   : > { %v721_v41 = vrot.slane %v720_v40, 1  ;;  %v857_v46 = vrot.slane %v856_v39, 1 }
  0xc4   : > { %1229 = vrot.lane.b32.xlu1 %v1227_v30, %s1575_s8  ;;  %1094 = vrot.lane.b32.xlu0 %v1092_v31, %s1577_s16  ;;  %v995_v30 = vmul.f32 %v994_v21, %v1653_v45  ;;  %v1257_v31 = vmul.f32 %v1256_v24, %v1736_v2 }
  0xc5   : > { %v722_v47 = vsel %vm285_vm3, %v720_v40, %v721_v41  ;;  %v858_v60 = vsel %vm274_vm2, %v856_v39, %v857_v46 }
  0xc6   : > { %v724_v51 = vadd.f32 %v722_v47, %v714_v42  ;;  %v595_v52 = vpop.permute.xlu1 %594  ;;  %v460_v53 = vpop.permute.xlu0 %459  ;;  %v860_v7 = vadd.f32 %v858_v60, %v850_v56  ;;  %v269_v47 = vmul.f32 %v268_v32, %v1653_v45 }
  0xc7   : > { %v596_v54 = vrot.slane %v595_v52, 7  ;;  %v461_v55 = vrot.slane %v460_v53, 7 }
  0xc8   : > { %969 = vrot.lane.b32.xlu1 %v967_v44, %s1579_s28  ;;  %834 = vrot.lane.b32.xlu0 %v1449_v48, %s1575_s8 }
  0xc9   : > { %v597_v61 = vsel %vm309_vm5, %v596_v54, %v595_v52  ;;  %v462_v62 = vsel %vm320_vm6, %v461_v55, %v460_v53  ;;  %v303_v52 = vstv %s1889_s6  ;;  %s2044_s6 = sld [smem:[#allocation3 + $0x37]] }
  0xca   : > { %v599_v0 = vadd.f32 %v597_v61, %v589_v37  ;;  %v464_v1 = vadd.f32 %v462_v62, %v454_v38  ;;  %v866_v3 = vpop.permute.xlu1 %865  ;;  %v731_v4 = vpop.permute.xlu0 %730  ;;  %v1494_v37 = vld [vmem:[%s2161_s1 + $0x6] ss:$8 sm:$0x3]  ;;  %v279_v38 = vstv %s1877_s26  ;;  %v304_v61 = vmul.f32 %v303_v52, %v1665_v57  ;;  %s1941_s26 = sld [smem:[#allocation3 + $0x54]] }
  0xcb   : > { %v867_v5 = vrot.slane %v866_v3, 1  ;;  %v732_v6 = vrot.slane %v731_v4, 7  ;;  %v280_v48 = vmul.f32 %v279_v38, %v1653_v45 }
  0xcc   : > { %1239 = vrot.lane.b32.xlu1 %v1237_v58, %s1577_s16  ;;  %1104 = vrot.lane.b32.xlu0 %v1102_v59, %s1578_s22  ;;  %v1139_v59 = vstv %s1893_s7  ;;  %s1587_s7 = smov 126  }
  0xcd   : > { %v868_v9 = vsel %vm285_vm3, %v866_v3, %v867_v5  ;;  %v733_v10 = vsel %vm296_vm4, %v732_v6, %v731_v4 }
  0xce   : > { %v870_v13 = vadd.f32 %v868_v9, %v860_v7  ;;  %v735_v14 = vadd.f32 %v733_v10, %v724_v51  ;;  %v470_v15 = vpop.permute.xlu1 %469  ;;  %v1001_v16 = vpop.permute.xlu0 %1000  ;;  %v290_v51 = vstv %s1884_s4  ;;  %s1586_s4 = smov 127  }
  0xcf   : > { %v471_v17 = vrot.slane %v470_v15, 7  ;;  %v1002_v22 = vrot.slane %v1001_v16, 1  ;;  %v291_v60 = vmul.f32 %v290_v51, %v1653_v45 }
  0xd0   : > { %1114 = vrot.lane.b32.xlu1 %v1112_v8, %s1579_s28  ;;  %978 = vrot.lane.b32.xlu0 %v1464_v11, %s1582_s27  ;;  %v1140_v8 = vmul.f32 %v1139_v59, %v1653_v45  ;;  %v342_v11 = vstv %s1913_s19  ;;  %s1947_s27 = sld [smem:[#allocation3 + $0x5b]]  ;;  %v384_v38 = vstv %s1941_s26  ;;  %s1592_s19 = smov 51  }
  0xd1   : > { %v472_v20 = vsel %vm331_vm7, %v471_v17, %v470_v15  ;;  %v1003_v33 = vsel %vm274_vm2, %v1001_v16, %v1002_v22  ;;  %v352_v15 = vstv %s1919_s21  ;;  %v343_v21 = vmul.f32 %v342_v11, %v1706_v36 }
  0xd2   : > { %v1891_v25 = vadd.f32 %v472_v20, %v464_v1  ;;  %v741_v26 = vpop.permute.xlu1 %740  ;;  %v605_v27 = vpop.permute.xlu0 %604  ;;  %v1005_v46 = vadd.f32 %v1003_v33, %v995_v30  ;;  %v325_v1 = vstv %s1908_s17  ;;  %v353_v22 = vmul.f32 %v352_v15, %v1706_v36  ;;  %s263_s17 = sld [smem:[#allocation3]] }
  0xd3   : > { %v742_v28 = vrot.slane %v741_v26, 7  ;;  %v606_v29 = vrot.slane %v605_v27, 7  ;;  %v326_v10 = vmul.f32 %v325_v1, %v1665_v57 }
  0xd4   : > { %1123 = vrot.lane.b32.xlu1 %v1479_v18, %s1583_s10  ;;  %1249 = vrot.lane.b32.xlu0 %v1247_v19, %s1578_s22  ;;  %s1588_s10 = smov 125  }
  0xd5   : > { %v743_v34 = vsel %vm309_vm5, %v742_v28, %v741_v26  ;;  %v607_v35 = vsel %vm320_vm6, %v606_v29, %v605_v27  ;;  %v362_v27 = vstv %s1926_s24  ;;  %v374_v28 = vstv %s1931_s25  ;;  %s184_s25 = scalar_lea.vmem %s2163_s3, %s1497_s20 }
  0xd6   : > { %v745_v39 = vadd.f32 %v743_v34, %v735_v14  ;;  %v609_v40 = vadd.f32 %v607_v35, %v599_v0  ;;  %v1011_v41 = vpop.permute.xlu1 %1010  ;;  %v876_v42 = vpop.permute.xlu0 %875  ;;  %v314_v0 = vstv %s1899_s11  ;;  %v363_v34 = vmul.f32 %v362_v27, %v1706_v36  ;;  %s1589_s11 = smov 124  }
  0xd7   : > { %v1012_v43 = vrot.slane %v1011_v41, 1  ;;  %v877_v44 = vrot.slane %v876_v42, 7  ;;  %v315_v9 = vmul.f32 %v314_v0, %v1665_v57  ;;  %v375_v35 = vmul.f32 %v374_v28, %v1736_v2 }
  0xd8   : > { %1268 = vrot.lane.b32.xlu1 %v1494_v37, %s1584_s18  ;;  %1259 = vrot.lane.b32.xlu0 %v1257_v31, %s1579_s28  ;;  %s1398_s18 = sld [smem:[#allocation3 + $0x31]] }
  0xd9   : > { %v1013_v49 = vsel %vm285_vm3, %v1011_v41, %v1012_v43  ;;  %v878_v50 = vsel %vm296_vm4, %v877_v44, %v876_v42 }
  0xda   : > { %v1015_v53 = vadd.f32 %v1013_v49, %v1005_v46  ;;  %v880_v54 = vadd.f32 %v878_v50, %v870_v13  ;;  %v615_v55 = vpop.permute.xlu1 %614  ;;  %v1146_v56 = vpop.permute.xlu0 %1145  ;;  %v385_v46 = vmul.f32 %v384_v38, %v1736_v2 }
  0xdb   : > { %v616_v58 = vrot.slane %v615_v55, 7  ;;  %v1147_v63 = vrot.slane %v1146_v56, 1 }
  0xdc   : > { %271 = vrot.lane.b32.xlu0 %v269_v47, %s1574_s5  ;;  %282 = vrot.lane.b32.xlu1 %v280_v48, %s1576_s9 }
  0xdd   : > { %v617_v62 = vsel %vm331_vm7, %v616_v58, %v615_v55  ;;  %v1148_v12 = vsel %vm274_vm2, %v1146_v56, %v1147_v63  ;;  %v403_v56 = vld [vmem:[%s2161_s1] ss:$8 sm:$0x3] }
  0xde   : > { %v1933_v3 = vadd.f32 %v617_v62, %v609_v40  ;;  %v886_v4 = vpop.permute.xlu1 %885  ;;  %v751_v5 = vpop.permute.xlu0 %750  ;;  %v1150_v20 = vadd.f32 %v1148_v12, %v1140_v8 }
  0xdf   : > { %v887_v6 = vrot.slane %v886_v4, 7  ;;  %v752_v7 = vrot.slane %v751_v5, 7 }
  0xe0   : > { %293 = vrot.lane.b32.xlu0 %v291_v60, %s1575_s8  ;;  %306 = vrot.lane.b32.xlu1 %v304_v61, %s1577_s16 }
  0xe1   : > { %v888_v13 = vsel %vm309_vm5, %v887_v6, %v886_v4  ;;  %v753_v14 = vsel %vm320_vm6, %v752_v7, %v751_v5 }
  0xe2   : > { %v890_v45 = vadd.f32 %v888_v13, %v880_v54  ;;  %v755_v16 = vadd.f32 %v753_v14, %v745_v39  ;;  %v1156_v17 = vpop.permute.xlu1 %1155  ;;  %v1021_v18 = vpop.permute.xlu0 %1020  ;;  %v394_v39 = vstv %s1947_s27 }
  0xe3   : > { %v1157_v19 = vrot.slane %v1156_v17, 1  ;;  %v1022_v57 = vrot.slane %v1021_v18, 7  ;;  %v395_v47 = vmul.f32 %v394_v39, %v1736_v2 }
  0xe4   : > { %317 = vrot.lane.b32.xlu0 %v315_v9, %s1578_s22  ;;  %328 = vrot.lane.b32.xlu1 %v326_v10, %s1579_s28 }
  0xe5   : > { %v1158_v24 = vsel %vm285_vm3, %v1156_v17, %v1157_v19  ;;  %v1023_v26 = vsel %vm296_vm4, %v1022_v57, %v1021_v18 }
  0xe6   : > { %v1160_v29 = vadd.f32 %v1158_v24, %v1150_v20  ;;  %v1025_v30 = vadd.f32 %v1023_v26, %v1015_v53  ;;  %v761_v31 = vpop.permute.xlu1 %760  ;;  %v1957_v32 = vpop.permute.xlu0 %483 }
  0xe7   : > { %v762_v33 = vrot.slane %v761_v31, 7 }
  0xe8   : > { %345 = vrot.lane.b32.xlu0 %v343_v21, %s1574_s5  ;;  %355 = vrot.lane.b32.xlu1 %v353_v22, %s1576_s9  ;;  %s1585_s9 = smov 77   ;;  %v485_v22 = vrot.slane %v1957_v32, 1 }
  0xe9   : > { %v763_v37 = vsel %vm331_vm7, %v762_v33, %v761_v31 }
  0xea   : > { %v1966_v40 = vadd.f32 %v763_v37, %v755_v16  ;;  %v1031_v41 = vpop.permute.xlu1 %1030  ;;  %v896_v42 = vpop.permute.xlu0 %895 }
  0xeb   : > { %v1032_v43 = vrot.slane %v1031_v41, 7  ;;  %v897_v44 = vrot.slane %v896_v42, 7 }
  0xec   : > { %365 = vrot.lane.b32.xlu0 %v363_v34, %s1575_s8  ;;  %377 = vrot.lane.b32.xlu1 %v375_v35, %s1577_s16  ;;  %s1412_s16 = sld [smem:[#allocation3 + $0x32]] }
  0xed   : > { %v1033_v48 = vsel %vm309_vm5, %v1032_v43, %v1031_v41  ;;  %v898_v49 = vsel %vm320_vm6, %v897_v44, %v896_v42 }
  0xee   : > { %v1035_v50 = vadd.f32 %v1033_v48, %v1025_v30  ;;  %v900_v51 = vadd.f32 %v898_v49, %v890_v45  ;;  %v494_v52 = vpop.permute.xlu1 %493  ;;  %v1166_v53 = vpop.permute.xlu0 %1165 }
  0xef   : > { %v1167_v54 = vrot.slane %v1166_v53, 7  ;;  %v495_v26 = vrot.slane %v494_v52, 1 }
  0xf0   : > { %387 = vrot.lane.b32.xlu0 %v385_v46, %s1578_s22  ;;  %397 = vrot.lane.b32.xlu1 %v395_v47, %s1579_s28  ;;  %s1427_s22 = sld [smem:[#allocation3 + $0x33]] }
  0xf1   : > { %v1168_v55 = vsel %vm296_vm4, %v1167_v54, %v1166_v53  ;;  %v496_v33 = vsel %vm285_vm3, %v494_v52, %v495_v26  ;;  %s2026_s28 = sld [smem:[#allocation3 + $0x34]] }
  0xf2   : > { %v1170_v2 = vadd.f32 %v1168_v55, %v1160_v29  ;;  %v906_v58 = vpop.permute.xlu1 %905  ;;  %v1980_v59 = vpop.permute.xlu0 %628  ;;  %v476_v57 = vstv %s1412_s16  ;;  %v486_v29 = vsel %vm274_vm2, %v1957_v32, %v485_v22 }
  0xf3   : > { %v907_v60 = vrot.slane %v906_v58, 7  ;;  %v477_v24 = vmul.f32 %v476_v57, %v1706_v36 }
  0xf4   : > { %405 = vrot.lane.b32.xlu0 %v403_v56, %s1585_s9 }
  0xf5   : > { %v908_v61 = vsel %vm331_vm7, %v907_v60, %v906_v58  ;;  %v478_v31 = vadd.f32 %v477_v24, %v1891_v25  ;;  %v630_v25 = vrot.slane %v1980_v59, 1 }
  0xf6   : > { %v1983_v62 = vadd.f32 %v908_v61, %v900_v51  ;;  %v1176_v63 = vpop.permute.xlu1 %1175  ;;  %v1041_v0 = vpop.permute.xlu0 %1040  ;;  %v621_v43 = vstv %s1427_s22 }
  0xf7   : > { %v1177_v1 = vrot.slane %v1176_v63, 7  ;;  %v1042_v4 = vrot.slane %v1041_v0, 7  ;;  %v488_v35 = vadd.f32 %v486_v29, %v478_v31 }
  0xf9   : > { %v1178_v5 = vsel %vm309_vm5, %v1177_v1, %v1176_v63  ;;  %v1043_v6 = vsel %vm320_vm6, %v1042_v4, %v1041_v0  ;;  %v498_v42 = vadd.f32 %v496_v33, %v488_v35 }
  0xfa   : > { %v1987_v7 = vadd.f32 %v1178_v5, %v1170_v2  ;;  %v1989_v8 = vadd.f32 %v1043_v6, %v1035_v50  ;;  %v639_v9 = vpop.permute.xlu1 %638  ;;  %v504_v10 = vpop.permute.xlu0 %503  ;;  %v622_v50 = vmul.f32 %v621_v43, %v1706_v36  ;;  %v631_v2 = vsel %vm274_vm2, %v1980_v59, %v630_v25 }
  0xfb   : > { %v505_v30 = vrot.slane %v504_v10, 1  ;;  %v640_v52 = vrot.slane %v639_v9, 1 }
  0xfc   : > { %v623_v61 = vadd.f32 %v622_v50, %v1933_v3  ;;  %v767_v3 = vstv %s2026_s28 }
  0xfd   : > { %v506_v39 = vsel %vm296_vm4, %v504_v10, %v505_v30  ;;  %v641_v0 = vsel %vm285_vm3, %v639_v9, %v640_v52  ;;  %v768_v31 = vmul.f32 %v767_v3, %v1706_v36 }
  0xfe   : > { %v1991_v11 = vpop.permute.xlu1 %1050  ;;  %v1993_v12 = vpop.permute.xlu0 %774  ;;  %v508_v47 = vadd.f32 %v506_v39, %v498_v42  ;;  %v633_v5 = vadd.f32 %v631_v2, %v623_v61 }
  0xff   : > { %v1052_v30 = vrot.slane %v1991_v11, 7 }
 0x100   : > { %v643_v57 = vadd.f32 %v641_v0, %v633_v5 }
 0x101   : > { %v1053_v36 = vsel %vm331_vm7, %v1052_v30, %v1991_v11 }
 0x102   : > { %v514_v13 = vpop.permute.xlu1 %513  ;;  %v1995_v14 = vpop.permute.xlu0 %1185  ;;  %v1055_v61 = vadd.f32 %v1053_v36, %v1989_v8 }
 0x103   : > { %v515_v34 = vrot.slane %v514_v13, 7 }
 0x105   : > { %v516_v44 = vsel %vm309_vm5, %v515_v34, %v514_v13 }
 0x106   : > { %v1997_v15 = vpop.permute.xlu1 %784  ;;  %v649_v45 = vpop.permute.xlu0 %648  ;;  %v518_v51 = vadd.f32 %v516_v44, %v508_v47  ;;  %v1057_v47 = vstv %s2040_s30 }
 0x107   : > { %v650_v58 = vrot.slane %v649_v45, 1 }
 0x10a   : > { %v1999_v16 = vpop.permute.xlu1 %1195  ;;  %v2001_v17 = vpop.permute.xlu0 %919 }
 0x10b   : > { %v921_v11 = vrot.slane %v2001_v17, 1 }
 0x10e   : > { %v659_v18 = vpop.permute.xlu1 %658  ;;  %v524_v19 = vpop.permute.xlu0 %523 }
 0x10f   : > { %v525_v41 = vrot.slane %v524_v19, 7  ;;  %v660_v1 = vrot.slane %v659_v18, 7 }
 0x111   : > { %v526_v49 = vsel %vm320_vm6, %v525_v41, %v524_v19  ;;  %v651_v19 = vsel %vm296_vm4, %v649_v45, %v650_v58  ;;  %v661_v9 = vsel %vm309_vm5, %v660_v1, %v659_v18  ;;  %v776_v45 = vrot.slane %v1993_v12, 1 }
 0x112   : > { %v2003_v20 = vpop.permute.xlu1 %929  ;;  %v2005_v21 = vpop.permute.xlu0 %795  ;;  %v528_v54 = vadd.f32 %v526_v49, %v518_v51  ;;  %v653_v24 = vadd.f32 %v651_v19, %v643_v57  ;;  %v786_v18 = vrot.slane %v1997_v15, 1  ;;  %v1187_v49 = vrot.slane %v1995_v14, 7 }
 0x113   : > { %v777_v42 = vsel %vm274_vm2, %v1993_v12, %v776_v45  ;;  %v797_v43 = vrot.slane %v2005_v21, 7  ;;  %v1197_v58 = vrot.slane %v1999_v16, 7  ;;  %v931_v5 = vrot.slane %v2003_v20, 1 }
 0x114   : > { %v663_v33 = vadd.f32 %v661_v9, %v653_v24  ;;  %v787_v50 = vsel %vm285_vm3, %v1997_v15, %v786_v18 }
 0x115   : > { %v1198_v3 = vsel %vm331_vm7, %v1197_v58, %v1999_v16  ;;  %v932_v30 = vsel %vm285_vm3, %v2003_v20, %v931_v5 }
 0x116   : > { %v534_v27 = vpop.permute.xlu1 %533  ;;  %v2009_v28 = vpop.permute.xlu0 %1064 }
 0x117   : > { %v535_v46 = vrot.slane %v534_v27, 7  ;;  %v1066_v8 = vrot.slane %v2009_v28, 1 }
 0x119   : > { %v536_v53 = vsel %vm331_vm7, %v535_v46, %v534_v27  ;;  %v769_v46 = vadd.f32 %v768_v31, %v1966_v40  ;;  %v798_v40 = vsel %vm296_vm4, %v797_v43, %v2005_v21 }
 0x11a   : > { %v2015_v37 = vpop.permute.xlu1 %805  ;;  %v669_v38 = vpop.permute.xlu0 %668  ;;  %v538_v63 = vadd.f32 %v536_v53, %v528_v54  ;;  %v1202_v53 = vstv %s2044_s6 }
 0x11b   : > { %v670_v59 = vrot.slane %v669_v38, 7  ;;  %v807_v51 = vrot.slane %v2015_v37, 7  ;;  %v779_v12 = vadd.f32 %v777_v42, %v769_v46 }
 0x11d   : > { %v671_v29 = vsel %vm320_vm6, %v670_v59, %v669_v38  ;;  %v912_v38 = vstv %s2038_s29  ;;  %v789_v15 = vadd.f32 %v787_v50, %v779_v12  ;;  %v808_v21 = vsel %vm309_vm5, %v807_v51, %v2015_v37 }
 0x11e   : > { %v2019_v32 = vpop.permute.xlu1 %1074  ;;  %v2021_v48 = vpop.permute.xlu0 %939  ;;  %v673_v35 = vadd.f32 %v671_v29, %v663_v33 }
 0x11f   : > { %v941_v9 = vrot.slane %v2021_v48, 7  ;;  %v1076_v29 = vrot.slane %v2019_v32, 1 }
 0x121   : > { %v1077_v43 = vsel %vm285_vm3, %v2019_v32, %v1076_v29 }
 0x122   : > { %v543_v55 = vpop.permute.xlu1 %542  ;;  %v2029_v56 = vpop.permute.xlu0 %1209 }
 0x123   : > { %v544_v60 = vrot.slane %v543_v55, 7 }
 0x125   : > { %v546_v4 = vsel %vm545_vm8, %v544_v60, %v543_v55 }
 0x126   : > { %v548_v6 = vmul.f32 %v546_v4, %v538_v63  ;;  %v2035_v10 = vpop.permute.xlu1 %815  ;;  %v679_v13 = vpop.permute.xlu0 %678  ;;  %v2077_v63 = vld [vmem:[#allocation2 + $0x1] ss:$2 sm:$0x7]  ;;  %v1188_v4 = vsel %vm320_vm6, %v1187_v49, %v1995_v14  ;;  %v922_v14 = vsel %vm274_vm2, %v2001_v17, %v921_v11 }
 0x127   : > { %v680_v22 = vrot.slane %v679_v13, 7  ;;  %v817_v60 = vrot.slane %v2035_v10, 7  ;;  %v913_v0 = vmul.f32 %v2077_v63, %v912_v38  ;;  %v1058_v1 = vmul.f32 %v2077_v63, %v1057_v47 }
 0x128   : > { %550 = vrot.lane.b32.xlu1 %v548_v6, %s1586_s4  ;;  %v1203_v19 = vmul.f32 %v2077_v63, %v1202_v53 }
 0x129   : > { %v681_v34 = vsel %vm331_vm7, %v680_v22, %v679_v13  ;;  %v800_v13 = vadd.f32 %v798_v40, %v789_v15  ;;  %v818_v37 = vsel %vm320_vm6, %v817_v60, %v2035_v10  ;;  %v1190_v22 = vadd.f32 %v1188_v4, %v1987_v7 }
 0x12a   : > { %v2046_v26 = vpop.permute.xlu1 %1084  ;;  %v2048_v27 = vpop.permute.xlu0 %949  ;;  %v683_v25 = vadd.f32 %v681_v34, %v673_v35  ;;  %v914_v24 = vadd.f32 %v913_v0, %v1983_v62  ;;  %v1059_v31 = vadd.f32 %v1058_v1, %v1055_v61  ;;  %v1067_v10 = vsel %vm274_vm2, %v2009_v28, %v1066_v8 }
 0x12b   : > { %v810_v45 = vadd.f32 %v808_v21, %v800_v13  ;;  %v951_v16 = vrot.slane %v2048_v27, 7  ;;  %v1200_v33 = vadd.f32 %v1198_v3, %v1190_v22  ;;  %v942_v62 = vsel %vm296_vm4, %v941_v9, %v2021_v48 }
 0x12c   : > { %v924_v18 = vadd.f32 %v922_v14, %v914_v24  ;;  %v1069_v49 = vadd.f32 %v1067_v10, %v1059_v31 }
 0x12d   : > { %v820_v34 = vadd.f32 %v818_v37, %v810_v45  ;;  %v952_v28 = vsel %vm309_vm5, %v951_v16, %v2048_v27  ;;  %v1204_v61 = vadd.f32 %v1203_v19, %v1200_v33 }
 0x12e   : > { %v688_v39 = vpop.permute.xlu1 %687  ;;  %v2056_v41 = vpop.permute.xlu0 %1219  ;;  %v934_v38 = vadd.f32 %v932_v30, %v924_v18 }
 0x12f   : > { %v689_v44 = vrot.slane %v688_v39, 7  ;;  %v1221_v50 = vrot.slane %v2056_v41, 1 }
 0x130   : > { %v944_v48 = vadd.f32 %v942_v62, %v934_v38 }
 0x131   : > { %v691_v52 = vsel %vm690_vm9, %v689_v44, %v688_v39  ;;  %v1086_v39 = vrot.slane %v2046_v26, 7  ;;  %v1211_v44 = vrot.slane %v2029_v56, 1 }
 0x132   : > { %v693_v54 = vmul.f32 %v691_v52, %v683_v25  ;;  %v960_v55 = vpop.permute.xlu1 %959  ;;  %v826_v2 = vpop.permute.xlu0 %825  ;;  %v954_v58 = vadd.f32 %v952_v28, %v944_v48  ;;  %v1543_v28 = vld [vmem:[#allocation2] ss:$2 sm:$0x7] }
 0x133   : > { %v827_v6 = vrot.slane %v826_v2, 7  ;;  %v961_v42 = vrot.slane %v960_v55, 7  ;;  %v1087_v32 = vsel %vm296_vm4, %v1086_v39, %v2046_v26  ;;  %v1212_v27 = vsel %vm274_vm2, %v2029_v56, %v1211_v44 }
 0x134   : > { %695 = vrot.lane.b32.xlu0 %v693_v54, %s1587_s7  ;;  %v1222_v26 = vsel %vm285_vm3, %v2056_v41, %v1221_v50  ;;  %v1214_v56 = vadd.f32 %v1212_v27, %v1204_v61 }
 0x135   : > { %v828_v17 = vsel %vm331_vm7, %v827_v6, %v826_v2  ;;  %v962_v53 = vsel %vm320_vm6, %v961_v42, %v960_v55  ;;  %v1079_v2 = vadd.f32 %v1077_v43, %v1069_v49  ;;  %v265_v43 = vstv %s263_s17 }
 0x136   : > { %v2088_v59 = vpop.permute.xlu1 %1229  ;;  %v1095_v57 = vpop.permute.xlu0 %1094  ;;  %v830_v36 = vadd.f32 %v828_v17, %v820_v34  ;;  %v964_v55 = vadd.f32 %v962_v53, %v954_v58  ;;  %v1224_v14 = vadd.f32 %v1222_v26, %v1214_v56 }
 0x137   : > { %v1096_v46 = vrot.slane %v1095_v57, 7  ;;  %v1231_v11 = vrot.slane %v2088_v59, 7  ;;  %v1089_v15 = vadd.f32 %v1087_v32, %v1079_v2 }
 0x139   : > { %v1097_v40 = vsel %vm309_vm5, %v1096_v46, %v1095_v57  ;;  %v1232_v57 = vsel %vm296_vm4, %v1231_v11, %v2088_v59  ;;  %v266_v46 = vmul.f32 %v1543_v28, %v265_v43 }
 0x13a   : > { %v970_v7 = vpop.permute.xlu1 %969  ;;  %v835_v35 = vpop.permute.xlu0 %834  ;;  %v1099_v13 = vadd.f32 %v1097_v40, %v1089_v15  ;;  %v1234_v30 = vadd.f32 %v1232_v57, %v1224_v14 }
 0x13b   : > { %v836_v20 = vrot.slane %v835_v35, 7  ;;  %v971_v47 = vrot.slane %v970_v7, 7 }
 0x13d   : > { %v837_v25 = vsel %vm296_vm4, %v836_v20, %v835_v35  ;;  %v972_v60 = vsel %vm331_vm7, %v971_v47, %v970_v7 }
 0x13e   : > { %v839_v51 = vmul.f32 %v837_v25, %v830_v36  ;;  %v1240_v52 = vpop.permute.xlu1 %1239  ;;  %v1105_v12 = vpop.permute.xlu0 %1104  ;;  %v974_v8 = vadd.f32 %v972_v60, %v964_v55  ;;  %v338_v55 = vstv %s1398_s18 }
 0x13f   : > { %v1106_v54 = vrot.slane %v1105_v12, 7  ;;  %v1241_v4 = vrot.slane %v1240_v52, 7 }
 0x140   : > { %841 = vrot.lane.b32.xlu1 %v839_v51, %s1588_s10 }
 0x141   : > { %v1107_v5 = vsel %vm320_vm6, %v1106_v54, %v1105_v12  ;;  %v1242_v24 = vsel %vm309_vm5, %v1241_v4, %v1240_v52  ;;  %v339_v4 = vmul.f32 %v2077_v63, %v338_v55 }
 0x142   : > { %v1115_v0 = vpop.permute.xlu1 %1114  ;;  %v979_v1 = vpop.permute.xlu0 %978  ;;  %v1109_v41 = vadd.f32 %v1107_v5, %v1099_v13  ;;  %v1244_v17 = vadd.f32 %v1242_v24, %v1234_v30 }
 0x143   : > { %v1116_v21 = vrot.slane %v1115_v0, 7  ;;  %v980_v6 = vrot.slane %v979_v1, 7 }
 0x145   : > { %v1117_v19 = vsel %vm331_vm7, %v1116_v21, %v1115_v0  ;;  %v982_v3 = vsel %vm981_vm10, %v980_v6, %v979_v1 }
 0x146   : > { %v984_v9 = vmul.f32 %v982_v3, %v974_v8  ;;  %v1124_v37 = vpop.permute.xlu1 %1123  ;;  %v1250_v22 = vpop.permute.xlu0 %1249  ;;  %v1119_v31 = vadd.f32 %v1117_v19, %v1109_v41 }
 0x147   : > { %v1125_v45 = vrot.slane %v1124_v37, 7  ;;  %v1251_v29 = vrot.slane %v1250_v22, 7 }
 0x148   : > { %986 = vrot.lane.b32.xlu0 %v984_v9, %s1589_s11 }
 0x149   : > { %v1127_v16 = vsel %vm1126_vm11, %v1125_v45, %v1124_v37  ;;  %v1252_v59 = vsel %vm320_vm6, %v1251_v29, %v1250_v22 }
 0x14a   : > { %v1129_v33 = vmul.f32 %v1127_v16, %v1119_v31  ;;  %v1269_v18 = vpop.permute.xlu1 %1268  ;;  %v1260_v10 = vpop.permute.xlu0 %1259  ;;  %v1254_v35 = vadd.f32 %v1252_v59, %v1244_v17 }
 0x14b   : > { %v1270_v34 = vrot.slane %v1269_v18, 7  ;;  %v1261_v7 = vrot.slane %v1260_v10, 7 }
 0x14c   : > { %1131 = vrot.lane.b32.xlu1 %v1129_v33, %s1590_s14 }
 0x14d   : > { %v1262_v62 = vsel %vm331_vm7, %v1261_v7, %v1260_v10  ;;  %v1272_v42 = vsel %vm1271_vm12, %v1270_v34, %v1269_v18 }
 0x14e   : > { %v1264_v39 = vadd.f32 %v1262_v62, %v1254_v35  ;;  %v272_v38 = vpop.permute.xlu0 %271  ;;  %v283_v36 = vpop.permute.xlu1 %282 }
 0x14f   : > { %v273_v44 = vrot.slane %v272_v38, 1  ;;  %v284_v25 = vrot.slane %v283_v36, 1 }
 0x150   : > { %v1274_v20 = vmul.f32 %v1272_v42, %v1264_v39 }
 0x151   : > { %v275_v47 = vsel %vm274_vm2, %v272_v38, %v273_v44  ;;  %v286_v50 = vsel %vm285_vm3, %v283_v36, %v284_v25 }
 0x152   : > { %1276 = vrot.lane.b32.xlu0 %v1274_v20, %s1591_s15  ;;  %v294_v49 = vpop.permute.xlu0 %293  ;;  %v277_v48 = vadd.f32 %v275_v47, %v266_v46  ;;  %v307_v52 = vpop.permute.xlu1 %306 }
 0x153   : > { %v295_v51 = vrot.slane %v294_v49, 1  ;;  %v308_v53 = vrot.slane %v307_v52, 7 }
 0x154   : > { %v288_v12 = vadd.f32 %v286_v50, %v277_v48 }
 0x155   : > { %v297_v32 = vsel %vm296_vm4, %v294_v49, %v295_v51  ;;  %v310_v58 = vsel %vm309_vm5, %v308_v53, %v307_v52 }
 0x156   : > { %v318_v54 = vpop.permute.xlu0 %317  ;;  %v299_v2 = vadd.f32 %v297_v32, %v288_v12  ;;  %v329_v11 = vpop.permute.xlu1 %328 }
 0x157   : > { %v319_v27 = vrot.slane %v318_v54, 7  ;;  %v330_v61 = vrot.slane %v329_v11, 7 }
 0x158   : > { %v312_v40 = vadd.f32 %v310_v58, %v299_v2 }
 0x159   : > { %v321_v60 = vsel %vm320_vm6, %v319_v27, %v318_v54  ;;  %v332_v26 = vsel %vm331_vm7, %v330_v61, %v329_v11  ;;  %v1291_v61 = vsub.s32 0, %v1650_v23 }
 0x15a   : > { %v323_v15 = vadd.f32 %v321_v60, %v312_v40  ;;  %v346_v0 = vpop.permute.xlu0 %345  ;;  %v356_v21 = vpop.permute.xlu1 %355  ;;  %v1299_v60 = vsub.s32 2, %v1650_v23 }
 0x15b   : > { %v347_v5 = vrot.slane %v346_v0, 1  ;;  %v357_v13 = vrot.slane %v356_v21, 1 }
 0x15c   : > { %v334_v1 = vadd.f32 %v332_v26, %v323_v15  ;;  %v1295_v15 = vsub.s32 1, %v1650_v23 }
 0x15d   : > { %v348_v56 = vsel %vm274_vm2, %v346_v0, %v347_v5  ;;  %v358_v19 = vsel %vm285_vm3, %v356_v21, %v357_v13  ;;  %vm989_vm2 = vcmask 1014784   ;;  %vm1134_vm3 = vcmask 1006592   ;;  %v1287_v13 = vld [vmem:[%s1643_s23] sm:$0xff] }
 0x15e   : > { %v340_v6 = vadd.f32 %v339_v4, %v334_v1  ;;  %v366_v8 = vpop.permute.xlu0 %365  ;;  %v378_v14 = vpop.permute.xlu1 %377 }
 0x15f   : > { %v367_v3 = vrot.slane %v366_v8, 1  ;;  %v379_v37 = vrot.slane %v378_v14, 7 }
 0x160   : > { %v350_v57 = vadd.f32 %v348_v56, %v340_v6 }
 0x161   : > { %v368_v9 = vsel %vm296_vm4, %v366_v8, %v367_v3  ;;  %v380_v63 = vsel %vm309_vm5, %v379_v37, %v378_v14  ;;  %vm1279_vm4 = vcmask 998400   ;;  %vm1309_vm5 = vcmask 416768  }
 0x162   : > { %v360_v41 = vadd.f32 %v358_v19, %v350_v57  ;;  %v388_v22 = vpop.permute.xlu0 %387  ;;  %v398_v29 = vpop.permute.xlu1 %397 }
 0x163   : > { %v389_v45 = vrot.slane %v388_v22, 7  ;;  %v399_v16 = vrot.slane %v398_v29, 7 }
 0x164   : > { %v370_v24 = vadd.f32 %v368_v9, %v360_v41 }
 0x165   : > { %v390_v31 = vsel %vm320_vm6, %v389_v45, %v388_v22  ;;  %v400_v33 = vsel %vm331_vm7, %v399_v16, %v398_v29 }
 0x166   : > { %v382_v30 = vadd.f32 %v380_v63, %v370_v24  ;;  %v406_v59 = vpop.permute.xlu0 %405 }
 0x167   : > { %v407_v18 = vrot.slane %v406_v59, 7 }
 0x168   : > { %v392_v17 = vadd.f32 %v390_v31, %v382_v30 }
 0x169   : > { %v409_v35 = vsel %vm408_vm13, %v407_v18, %v406_v59 }
 0x16a   : > { %v402_v34 = vadd.f32 %v400_v33, %v392_v17 }
 0x16c   : > { %v411_v20 = vmul.f32 %v409_v35, %v402_v34 }
 0x19a   : > { %v551_v10 = vpop.permute.xlu1 %550 }
 0x19b   : > { %v552_v62 = vrot.slane %v551_v10, 1 }
 0x19d   : > { %v554_v43 = vsel %vm553_vm14, %v551_v10, %v552_v62 }
 0x19e   : > { %v556_v46 = vadd.f32 %v554_v43, %v411_v20 }
 0x1a6   : > { %v696_v7 = vpop.permute.xlu0 %695 }
 0x1a7   : > { %v697_v42 = vrot.slane %v696_v7, 1 }
 0x1a9   : > { %v699_v36 = vsel %vm698_vm15, %v696_v7, %v697_v42 }
 0x1aa   : > { %v701_v48 = vadd.f32 %v699_v36, %v556_v46 }
 0x1b2   : > { %v842_v39 = vpop.permute.xlu1 %841 }
 0x1b3   : > { %v843_v44 = vrot.slane %v842_v39, 1 }
 0x1b5   : > { %v845_v25 = vsel %vm844_vm1, %v842_v39, %v843_v44 }
 0x1b6   : > { %v847_v51 = vadd.f32 %v845_v25, %v701_v48 }
 0x1ba   : > { %v987_v38 = vpop.permute.xlu0 %986 }
 0x1bb   : > { %v988_v28 = vrot.slane %v987_v38, 1 }
 0x1bd   : > { %v990_v50 = vsel %vm989_vm2, %v987_v38, %v988_v28 }
 0x1be   : > { %v1132_v47 = vpop.permute.xlu1 %1131  ;;  %v992_v12 = vadd.f32 %v990_v50, %v847_v51 }
 0x1bf   : > { %v1133_v49 = vrot.slane %v1132_v47, 1 }
 0x1c1   : > { %v1135_v52 = vsel %vm1134_vm3, %v1132_v47, %v1133_v49 }
 0x1c2   : > { %v1137_v54 = vadd.f32 %v1135_v52, %v992_v12 }
 0x1c4   : > { %v1277_v32 = vpop.permute.xlu0 %1276 }
 0x1c5   : > { %v1278_v53 = vrot.slane %v1277_v32, 1 }
 0x1c7   : > { %v1280_v2 = vsel %vm1279_vm4, %v1277_v32, %v1278_v53 }
 0x1c8   : > { %v1282_v58 = vadd.f32 %v1280_v2, %v1137_v54 }
 0x1ca   : > { %v1283_v27 = vmul.f32 0.5, %v1282_v58 }
 0x1cc   : > { %1540 = vtanh.f32 %v1283_v27 }
 0x1d9   : > { %v1541_v11 = vpop.eup %1540 }
 0x1da   : > { %v1285_v40 = vmul.f32 0.5, %v1541_v11 }
 0x1dc   : > { %v1286_v26 = vadd.f32 0.5, %v1285_v40 }
 0x1de   : > { %v1300_v55 = vrot.slane %v1286_v26, %v1299_v60  ;;  %v1292_v0 = vrot.slane %v1286_v26, %v1291_v61  ;;  %v1296_v1 = vrot.slane %v1286_v26, %v1295_v15 }
 0x1e0   : > { %1304 = vrot.lane.b32.xlu0 %v1300_v55, %s1592_s19  ;;  %v1301_v4 = vcombine.low %v1292_v0, %v1296_v1 }
 0x1e2   : > { %1302 = vrot.lane.b32.xlu1 %v1301_v4, %s1592_s19 }
 0x252   : > { %v1305_v5 = vpop.permute.xlu0 %1304 }
 0x253   : > { %v1307_v6 = vrot.slane %v1305_v5, 4 }
 0x254   : > { %v1303_v21 = vpop.permute.xlu1 %1302 }
 0x255   : > { %v1306_v56 = vrot.slane %v1303_v21, 4 }
 0x257   : > { %v1308_v8 = vsel %vm190_vm0, %v1306_v56, %v1307_v6 }
 0x258   : > { %v1310_v23 = vsel %vm1309_vm5, %v1303_v21, %v1308_v8 }
 0x259   : > { %v1312_v57 = vmul.f32 %v1310_v23, %v1287_v13 }
 0x25b   : > { %1313 = vst [vmem:[%s184_s25] sm:$0xff] %v1312_v57 }
 0x25c PF: > { %s14_s12 = sadd.s32 1, %s1569_s12  }
 0x25d   : > { %p11_p1 = scmp.ge.s32.totalorder %s14_s12, 4  }
 0x25f   :  { %13 = sbr.rel (!%p11_p1) target bundleno = 1 (0x1), region = 78 }
 0x264   :  { %1335 = vsyncpa [#allocation4], 1 }
 0x265   :  { %1337 = vsyncpa [#allocation4 + $0x1], 1 }

</bundles_post_ra>
